<compile_context>
chip_gen: v7x
topology: tpu7x:2x2x1
jax: 0.10.0
libtpu: 0.0.40
codegen_flags: <defaults>
</compile_context>

<pallas_src>
import functools
import math

import jax
import jax.numpy as jnp
from jax.experimental import pallas as pl
from jax.experimental.pallas import tpu as pltpu

LN_EPS = 1e-12
NEG_INF = -1e9


def _choose_tile(dim, target, align):
    """Largest `align`-multiple tile <= target that divides dim; else the full dim."""
    if dim <= target:
        return dim
    for t in range(target, align - 1, -align):
        if dim % t == 0:
            return t
    # TODO(synk): pad ragged dims (e.g. vocab=30522) instead of falling back to full extent.
    return dim


# ----------------------------- dense (tiled matmul) -----------------------------

def _dense_kernel(x_ref, w_ref, b_ref, o_ref, acc_ref, *, activation):
    k = pl.program_id(2)

    @pl.when(k == 0)
    def _():
        acc_ref[...] = jnp.zeros_like(acc_ref)

    acc_ref[...] += jnp.dot(x_ref[...], w_ref[...],
                            preferred_element_type=jnp.float32)

    @pl.when(k == pl.num_programs(2) - 1)
    def _():
        y = acc_ref[...] + b_ref[...].astype(jnp.float32)
        if activation == "gelu":
            # exact (erf-based) GELU, as used by BERT
            y = 0.5 * y * (1.0 + jax.lax.erf(y * 0.7071067811865476))
        o_ref[...] = y.astype(o_ref.dtype)


def dense(x, w, b, *, activation=None, tm=256, tn=512, tk=512, out_dtype=None):
    """x: (M, K), w: (K, N) (= torch weight transposed), b: (N,) -> (M, N)."""
    M, K = x.shape
    N = w.shape[1]
    out_dtype = x.dtype if out_dtype is None else out_dtype
    tm = _choose_tile(M, tm, 8)
    tn = _choose_tile(N, tn, 128)
    tk = _choose_tile(K, tk, 128)
    grid = (M // tm, N // tn, K // tk)
    cost = pl.CostEstimate(
        flops=2 * M * N * K,
        transcendentals=M * N if activation == "gelu" else 0,
        bytes_accessed=(M * K * x.dtype.itemsize + K * N * w.dtype.itemsize
                        + N * 4 + M * N * jnp.dtype(out_dtype).itemsize))
    return pl.pallas_call(
        functools.partial(_dense_kernel, activation=activation),
        out_shape=jax.ShapeDtypeStruct((M, N), out_dtype),
        grid_spec=pltpu.PrefetchScalarGridSpec(
            num_scalar_prefetch=0,
            grid=grid,
            in_specs=[
                pl.BlockSpec((tm, tk), lambda i, j, k: (i, k)),
                pl.BlockSpec((tk, tn), lambda i, j, k: (k, j)),
                pl.BlockSpec((1, tn), lambda i, j, k: (0, j)),
            ],
            out_specs=pl.BlockSpec((tm, tn), lambda i, j, k: (i, j)),
            scratch_shapes=[pltpu.VMEM((tm, tn), jnp.float32)]),
        compiler_params=pltpu.CompilerParams(
            dimension_semantics=("parallel", "parallel", "arbitrary")),
        cost_estimate=cost,
    )(x, w, b.reshape(1, N))


# --------------- dense with fused bias + residual + LayerNorm epilogue ---------------

def _dense_ln_kernel(x_ref, w_ref, b_ref, r_ref, g_ref, bb_ref, o_ref, acc_ref):
    k = pl.program_id(1)

    @pl.when(k == 0)
    def _():
        acc_ref[...] = jnp.zeros_like(acc_ref)

    acc_ref[...] += jnp.dot(x_ref[...], w_ref[...],
                            preferred_element_type=jnp.float32)

    @pl.when(k == pl.num_programs(1) - 1)
    def _():
        y = (acc_ref[...] + b_ref[...].astype(jnp.float32)
             + r_ref[...].astype(jnp.float32))
        mean = jnp.mean(y, axis=-1, keepdims=True)
        yc = y - mean
        var = jnp.mean(yc * yc, axis=-1, keepdims=True)
        inv = jax.lax.rsqrt(var + LN_EPS)
        o_ref[...] = (yc * inv * g_ref[...].astype(jnp.float32)
                      + bb_ref[...].astype(jnp.float32)).astype(o_ref.dtype)


def dense_ln(x, w, b, residual, gamma, beta, *, tm=256, tk=512, out_dtype=None):
    """LayerNorm(x @ w + b + residual); N (=hidden) kept whole so LN can fuse."""
    M, K = x.shape
    N = w.shape[1]
    out_dtype = x.dtype if out_dtype is None else out_dtype
    tm = _choose_tile(M, tm, 8)
    tk = _choose_tile(K, tk, 128)
    grid = (M // tm, K // tk)
    cost = pl.CostEstimate(
        flops=2 * M * N * K + 10 * M * N,
        transcendentals=0,
        bytes_accessed=(M * K * x.dtype.itemsize + K * N * w.dtype.itemsize
                        + M * N * residual.dtype.itemsize
                        + M * N * jnp.dtype(out_dtype).itemsize))
    return pl.pallas_call(
        _dense_ln_kernel,
        out_shape=jax.ShapeDtypeStruct((M, N), out_dtype),
        grid_spec=pltpu.PrefetchScalarGridSpec(
            num_scalar_prefetch=0,
            grid=grid,
            in_specs=[
                pl.BlockSpec((tm, tk), lambda i, k: (i, k)),
                pl.BlockSpec((tk, N), lambda i, k: (k, 0)),
                pl.BlockSpec((1, N), lambda i, k: (0, 0)),
                pl.BlockSpec((tm, N), lambda i, k: (i, 0)),
                pl.BlockSpec((1, N), lambda i, k: (0, 0)),
                pl.BlockSpec((1, N), lambda i, k: (0, 0)),
            ],
            out_specs=pl.BlockSpec((tm, N), lambda i, k: (i, 0)),
            scratch_shapes=[pltpu.VMEM((tm, N), jnp.float32)]),
        compiler_params=pltpu.CompilerParams(
            dimension_semantics=("parallel", "arbitrary")),
        cost_estimate=cost,
    )(x, w, b.reshape(1, N), residual, gamma.reshape(1, N), beta.reshape(1, N))


# ------------------------- residual-free LayerNorm (embeddings) -------------------------

def _ln_kernel(x_ref, g_ref, b_ref, o_ref):
    x = x_ref[...].astype(jnp.float32)
    mean = jnp.mean(x, axis=-1, keepdims=True)
    xc = x - mean
    var = jnp.mean(xc * xc, axis=-1, keepdims=True)
    inv = jax.lax.rsqrt(var + LN_EPS)
    o_ref[...] = (xc * inv * g_ref[...].astype(jnp.float32)
                  + b_ref[...].astype(jnp.float32)).astype(o_ref.dtype)


def layernorm(x, gamma, beta, *, tm=512, out_dtype=None):
    M, H = x.shape
    out_dtype = x.dtype if out_dtype is None else out_dtype
    tm = _choose_tile(M, tm, 8)
    return pl.pallas_call(
        _ln_kernel,
        out_shape=jax.ShapeDtypeStruct((M, H), out_dtype),
        grid=(M // tm,),
        in_specs=[
            pl.BlockSpec((tm, H), lambda i: (i, 0)),
            pl.BlockSpec((1, H), lambda i: (0, 0)),
            pl.BlockSpec((1, H), lambda i: (0, 0)),
        ],
        out_specs=pl.BlockSpec((tm, H), lambda i: (i, 0)),
        compiler_params=pltpu.CompilerParams(dimension_semantics=("parallel",)),
    )(x, gamma.reshape(1, H), beta.reshape(1, H))


# ----------------------------------- attention -----------------------------------

def _attn_kernel(qkv_ref, bias_ref, o_ref, *, n_heads, scale):
    # qkv_ref: (1, S, 3H) packed [Q | K | V]; bias_ref: (1, 1, S); o_ref: (1, S, H)
    H = o_ref.shape[-1]
    Dh = H // n_heads
    bias = bias_ref[0].astype(jnp.float32)           # (1, S) -> broadcast over query rows
    ctxs = []
    for h in range(n_heads):                          # static unroll over heads
        q = qkv_ref[0, :, h * Dh:(h + 1) * Dh]
        k = qkv_ref[0, :, H + h * Dh:H + (h + 1) * Dh]
        v = qkv_ref[0, :, 2 * H + h * Dh:2 * H + (h + 1) * Dh]
        # scores = q @ k^T via dot_general (contract last dims; no explicit transpose)
        s = jax.lax.dot_general(q, k, (((1,), (1,)), ((), ())),
                                preferred_element_type=jnp.float32) * scale
        s = s + bias
        s = s - jnp.max(s, axis=-1, keepdims=True)
        p = jnp.exp(s)
        p = p / jnp.sum(p, axis=-1, keepdims=True)
        ctxs.append(jnp.dot(p.astype(v.dtype), v, preferred_element_type=jnp.float32))
    # single lane-dense (S, H) store
    o_ref[0] = jnp.concatenate(ctxs, axis=-1).astype(o_ref.dtype)


def attention(qkv, attn_bias, *, n_heads):
    """qkv: (B, S, 3H) fused Q|K|V; attn_bias: (B, 1, S) additive mask -> (B, S, H)."""
    B, S, H3 = qkv.shape
    H = H3 // 3
    scale = 1.0 / math.sqrt(H // n_heads)
    # TODO(synk): for long sequences, switch to a flash-style (tiled KV, online softmax) kernel.
    return pl.pallas_call(
        functools.partial(_attn_kernel, n_heads=n_heads, scale=scale),
        out_shape=jax.ShapeDtypeStruct((B, S, H), qkv.dtype),
        grid=(B,),
        in_specs=[
            pl.BlockSpec((1, S, H3), lambda b: (b, 0, 0)),
            pl.BlockSpec((1, 1, S), lambda b: (b, 0, 0)),
        ],
        out_specs=pl.BlockSpec((1, S, H), lambda b: (b, 0, 0)),
        compiler_params=pltpu.CompilerParams(dimension_semantics=("parallel",)),
    )(qkv, attn_bias)


# ------------------- tied LM head: logits + LogSoftmax, tiled over (M, V) -------------------

def _proj_lse_kernel(h_ref, e_ref, b_ref, lse_ref, m_ref, l_ref):
    j = pl.program_id(1)

    @pl.when(j == 0)
    def _():
        m_ref[...] = jnp.full_like(m_ref, -jnp.inf)
        l_ref[...] = jnp.zeros_like(l_ref)

    # logits tile = h @ E^T  (contract hidden dims; E stays (V, H), no transpose)
    logits = jax.lax.dot_general(h_ref[...], e_ref[...], (((1,), (1,)), ((), ())),
                                 preferred_element_type=jnp.float32)
    logits = logits + b_ref[...].astype(jnp.float32)
    m_prev = m_ref[...]
    m_new = jnp.maximum(m_prev, jnp.max(logits, axis=-1, keepdims=True))
    l_ref[...] = (l_ref[...] * jnp.exp(m_prev - m_new)
                  + jnp.sum(jnp.exp(logits - m_new), axis=-1, keepdims=True))
    m_ref[...] = m_new

    @pl.when(j == pl.num_programs(1) - 1)
    def _():
        lse_ref[...] = m_ref[...] + jnp.log(l_ref[...])


def _proj_out_kernel(h_ref, e_ref, b_ref, lse_ref, o_ref):
    logits = jax.lax.dot_general(h_ref[...], e_ref[...], (((1,), (1,)), ((), ())),
                                 preferred_element_type=jnp.float32)
    logits = logits + b_ref[...].astype(jnp.float32)
    o_ref[...] = (logits - lse_ref[...]).astype(o_ref.dtype)


def proj_lse(h, emb, bias, *, tm=256, tv=512):
    """Per-row logsumexp of (h @ emb^T + bias), online across V tiles. -> (M, 1) f32."""
    M, H = h.shape
    V = emb.shape[0]
    tm = _choose_tile(M, tm, 8)
    tv = _choose_tile(V, tv, 128)
    grid = (M // tm, V // tv)
    cost = pl.CostEstimate(flops=2 * M * V * H, transcendentals=M * V,
                           bytes_accessed=(M * H * h.dtype.itemsize
                                           + V * H * emb.dtype.itemsize + M * 4))
    return pl.pallas_call(
        _proj_lse_kernel,
        out_shape=jax.ShapeDtypeStruct((M, 1), jnp.float32),
        grid_spec=pltpu.PrefetchScalarGridSpec(
            num_scalar_prefetch=0,
            grid=grid,
            in_specs=[
                pl.BlockSpec((tm, H), lambda i, j: (i, 0)),
                pl.BlockSpec((tv, H), lambda i, j: (j, 0)),
                pl.BlockSpec((1, tv), lambda i, j: (0, j)),
            ],
            out_specs=pl.BlockSpec((tm, 1), lambda i, j: (i, 0)),
            scratch_shapes=[pltpu.VMEM((tm, 1), jnp.float32),
                            pltpu.VMEM((tm, 1), jnp.float32)]),
        compiler_params=pltpu.CompilerParams(
            dimension_semantics=("parallel", "arbitrary")),
        cost_estimate=cost,
    )(h, emb, bias.reshape(1, V))


def proj_logprobs(h, emb, bias, lse, *, tm=256, tv=512):
    """Log-probs = (h @ emb^T + bias) - lse, lane-dense (tm, tv) tiles. -> (M, V) f32."""
    M, H = h.shape
    V = emb.shape[0]
    tm = _choose_tile(M, tm, 8)
    tv = _choose_tile(V, tv, 128)
    grid = (M // tm, V // tv)
    cost = pl.CostEstimate(flops=2 * M * V * H, transcendentals=0,
                           bytes_accessed=(M * H * h.dtype.itemsize
                                           + V * H * emb.dtype.itemsize + 4 * M * V))
    return pl.pallas_call(
        _proj_out_kernel,
        out_shape=jax.ShapeDtypeStruct((M, V), jnp.float32),
        grid_spec=pltpu.PrefetchScalarGridSpec(
            num_scalar_prefetch=0,
            grid=grid,
            in_specs=[
                pl.BlockSpec((tm, H), lambda i, j: (i, 0)),
                pl.BlockSpec((tv, H), lambda i, j: (j, 0)),
                pl.BlockSpec((1, tv), lambda i, j: (0, j)),
                pl.BlockSpec((tm, 1), lambda i, j: (i, 0)),
            ],
            out_specs=pl.BlockSpec((tm, tv), lambda i, j: (i, j)),
            scratch_shapes=[]),
        compiler_params=pltpu.CompilerParams(
            dimension_semantics=("parallel", "parallel")),
        cost_estimate=cost,
    )(h, emb, bias.reshape(1, V), lse)


# ------------------------- parameters (deterministic) -------------------------

def init_params(key, *, vocab, hidden, n_layers, n_heads, intermediate,
                max_pos, type_vocab):
    del n_heads
    std = 0.02
    keys = jax.random.split(key, 4 + n_layers)
    params = {
        "word_emb": jax.random.normal(keys[0], (vocab, hidden), jnp.float32) * std,
        "pos_emb": jax.random.normal(keys[1], (max_pos, hidden), jnp.float32) * std,
        "type_emb": jax.random.normal(keys[2], (type_vocab, hidden), jnp.float32) * std,
        "emb_ln_g": jnp.ones((hidden,), jnp.float32),
        "emb_ln_b": jnp.zeros((hidden,), jnp.float32),
        # bias of the (weight-tied) output Linear
        "out_bias": jax.random.normal(keys[3], (vocab,), jnp.float32) * std,
        "layers": [],
    }
    for l in range(n_layers):
        lk = jax.random.split(keys[4 + l], 6)
        wq = jax.random.normal(lk[0], (hidden, hidden), jnp.float32) * std
        wk = jax.random.normal(lk[1], (hidden, hidden), jnp.float32) * std
        wv = jax.random.normal(lk[2], (hidden, hidden), jnp.float32) * std
        params["layers"].append({
            # fused QKV projection: (H, 3H)
            "wqkv": jnp.concatenate([wq, wk, wv], axis=1),
            "bqkv": jnp.zeros((3 * hidden,), jnp.float32),
            "wo": jax.random.normal(lk[3], (hidden, hidden), jnp.float32) * std,
            "bo": jnp.zeros((hidden,), jnp.float32),
            "ln1_g": jnp.ones((hidden,), jnp.float32),
            "ln1_b": jnp.zeros((hidden,), jnp.float32),
            "wi": jax.random.normal(lk[4], (hidden, intermediate), jnp.float32) * std,
            "bi": jnp.zeros((intermediate,), jnp.float32),
            "wo2": jax.random.normal(lk[5], (intermediate, hidden), jnp.float32) * std,
            "bo2": jnp.zeros((hidden,), jnp.float32),
            "ln2_g": jnp.ones((hidden,), jnp.float32),
            "ln2_b": jnp.zeros((hidden,), jnp.float32),
        })
    return params


# ------------------------------- forward pass -------------------------------

def encoder_layer(x, attn_bias, p, B, S, n_heads, cdt):
    M, H = x.shape
    qkv = dense(x, p["wqkv"].astype(cdt), p["bqkv"])                       # (M, 3H)
    ctx = attention(qkv.reshape(B, S, 3 * H), attn_bias, n_heads=n_heads)  # (B, S, H)
    # attn output projection + residual + LayerNorm, fused
    x = dense_ln(ctx.reshape(M, H), p["wo"].astype(cdt), p["bo"],
                 x, p["ln1_g"], p["ln1_b"])
    inter = dense(x, p["wi"].astype(cdt), p["bi"], activation="gelu")      # (M, 4H)
    # FFN output projection + residual + LayerNorm, fused
    x = dense_ln(inter, p["wo2"].astype(cdt), p["bo2"],
                 x, p["ln2_g"], p["ln2_b"])
    return x


def bert_finetune_forward(params, input_ids, input_tyi, input_attn_mask, *,
                          n_heads, compute_dtype=jnp.bfloat16):
    B, S = input_ids.shape
    V, H = params["word_emb"].shape
    cdt = compute_dtype

    # BERT embeddings: word + position + token-type, then LayerNorm.
    # (table gathers are glue and stay in plain JAX)
    emb = (params["word_emb"][input_ids]
           + params["pos_emb"][jnp.arange(S)][None, :, :]
           + params["type_emb"][input_tyi])                                # (B,S,H) f32
    x = layernorm(emb.reshape(B * S, H), params["emb_ln_g"], params["emb_ln_b"],
                  out_dtype=cdt)                                            # (M, H)

    # tiny (B,1,S) additive mask; broadcast to (S,S) happens inside the attention kernel
    mask = input_attn_mask.astype(jnp.float32)
    attn_bias = ((1.0 - mask) * NEG_INF)[:, None, :]

    for p in params["layers"]:
        x = encoder_layer(x, attn_bias, p, B, S, n_heads, cdt)

    # out = LogSoftmax(Linear(last_hidden_state)); Linear.weight tied to word embeddings.
    # Two tiled passes over V: online logsumexp, then lane-dense log-prob writeback.
    emb_c = params["word_emb"].astype(cdt)                                  # (V, H), no .T
    lse = proj_lse(x, emb_c, params["out_bias"])
    out = proj_logprobs(x, emb_c, params["out_bias"], lse)
    return out.reshape(B, S, V)


# ----------------------------------- main -----------------------------------

if __name__ == "__main__":
    VOCAB, HIDDEN, LAYERS, HEADS, INTER = 128, 32, 2, 2, 64
    B, S = 2, 8

    key = jax.random.PRNGKey(0)
    pkey, ikey, tkey = jax.random.split(key, 3)

    params = init_params(pkey, vocab=VOCAB, hidden=HIDDEN, n_layers=LAYERS,
                         n_heads=HEADS, intermediate=INTER, max_pos=64,
                         type_vocab=2)

    input_ids = jax.random.randint(ikey, (B, S), 0, VOCAB, dtype=jnp.int32)
    input_tyi = jax.random.randint(tkey, (B, S), 0, 2, dtype=jnp.int32)
    # one padded position in the second sequence to exercise the attention mask
    input_attn_mask = jnp.ones((B, S), jnp.int32).at[1, -1].set(0)

    fwd = jax.jit(functools.partial(bert_finetune_forward, n_heads=HEADS))
    out = fwd(params, input_ids, input_tyi, input_attn_mask)
    out = jax.block_until_ready(out)

    assert out.shape == (B, S, VOCAB)
    # LogSoftmax rows must exponentiate-sum to 1
    assert bool(jnp.allclose(jnp.exp(out).sum(-1), 1.0, atol=1e-4))
    print("KERNEL_OK")
</pallas_src>

<mosaic_0001>
module attributes {stable_mosaic.version = 11 : i64} {
  func.func @_ln_kernel(%arg0: i32, %arg1: memref<16x32xf32, #tpu.memory_space<vmem>>, %arg2: memref<1x32xf32, #tpu.memory_space<vmem>>, %arg3: memref<1x32xf32, #tpu.memory_space<vmem>>, %arg4: memref<16x32xbf16, #tpu.memory_space<vmem>>) attributes {dimension_semantics = [#tpu.dimension_semantics<parallel>], iteration_bounds = array<i64: 1>, scalar_prefetch = 0 : i64, scratch_operands = 0 : i64, tpu.core_type = #tpu.core_type<tc>, window_params = [{transform_indices = @transform_0, window_bounds = array<i64: 16, 32>}, {pipeline_mode = #tpu.pipeline_mode<synchronous>, transform_indices = @transform_1, window_bounds = array<i64: 1, 32>}, {pipeline_mode = #tpu.pipeline_mode<synchronous>, transform_indices = @transform_2, window_bounds = array<i64: 1, 32>}, {transform_indices = @transform_3, window_bounds = array<i64: 16, 32>}]} {
    %c0 = arith.constant 0 : index
    %c0_0 = arith.constant 0 : index
    %0 = vector.load %arg1[%c0, %c0_0] : memref<16x32xf32, #tpu.memory_space<vmem>>, vector<16x32xf32>
    %cst = arith.constant dense<0.000000e+00> : vector<16xf32>
    %1 = vector.multi_reduction <add>, %0, %cst [1] : vector<16x32xf32> to vector<16xf32>
    %2 = vector.shape_cast %1 : vector<16xf32> to vector<16x1xf32>
    %cst_1 = arith.constant 3.200000e+01 : f32
    %3 = vector.broadcast %cst_1 : f32 to vector<16x1xf32>
    %4 = arith.divf %2, %3 : vector<16x1xf32>
    %5 = vector.broadcast %4 : vector<16x1xf32> to vector<16x32xf32>
    %6 = arith.subf %0, %5 : vector<16x32xf32>
    %7 = arith.mulf %6, %6 : vector<16x32xf32>
    %cst_2 = arith.constant dense<0.000000e+00> : vector<16xf32>
    %8 = vector.multi_reduction <add>, %7, %cst_2 [1] : vector<16x32xf32> to vector<16xf32>
    %9 = vector.shape_cast %8 : vector<16xf32> to vector<16x1xf32>
    %cst_3 = arith.constant 3.200000e+01 : f32
    %10 = vector.broadcast %cst_3 : f32 to vector<16x1xf32>
    %11 = arith.divf %9, %10 : vector<16x1xf32>
    %cst_4 = arith.constant 9.99999996E-13 : f32
    %12 = vector.broadcast %cst_4 : f32 to vector<16x1xf32>
    %13 = arith.addf %11, %12 : vector<16x1xf32>
    %14 = math.rsqrt %13 : vector<16x1xf32>
    %15 = vector.broadcast %14 : vector<16x1xf32> to vector<16x32xf32>
    %16 = arith.mulf %6, %15 : vector<16x32xf32>
    %c0_5 = arith.constant 0 : index
    %c0_6 = arith.constant 0 : index
    %17 = vector.load %arg2[%c0_5, %c0_6] : memref<1x32xf32, #tpu.memory_space<vmem>>, vector<1x32xf32>
    %18 = vector.broadcast %17 : vector<1x32xf32> to vector<16x32xf32>
    %19 = arith.mulf %16, %18 : vector<16x32xf32>
    %c0_7 = arith.constant 0 : index
    %c0_8 = arith.constant 0 : index
    %20 = vector.load %arg3[%c0_7, %c0_8] : memref<1x32xf32, #tpu.memory_space<vmem>>, vector<1x32xf32>
    %21 = vector.broadcast %20 : vector<1x32xf32> to vector<16x32xf32>
    %22 = arith.addf %19, %21 : vector<16x32xf32>
    %23 = arith.truncf %22 : vector<16x32xf32> to vector<16x32xbf16>
    %c0_9 = arith.constant 0 : index
    %c0_10 = arith.constant 0 : index
    %24 = vector.load %arg4[%c0_9, %c0_10] : memref<16x32xbf16, #tpu.memory_space<vmem>>, vector<16x32xbf16>
    tpu.vector_store %arg4[%c0_9, %c0_10], %23 {strides = array<i32>} : memref<16x32xbf16, #tpu.memory_space<vmem>>, vector<16x32xbf16>,
    return
  }
  func.func @transform_0(%arg0: i32) -> (i32, i32) {
    %c0_i32 = arith.constant 0 : i32
    %c0_i32_0 = arith.constant 0 : i32
    return %arg0, %c0_i32 : i32, i32
  }
  func.func @transform_1(%arg0: i32) -> (i32, i32) {
    %c0_i32 = arith.constant 0 : i32
    %c0_i32_0 = arith.constant 0 : i32
    %c0_i32_1 = arith.constant 0 : i32
    return %c0_i32, %c0_i32_0 : i32, i32
  }
  func.func @transform_2(%arg0: i32) -> (i32, i32) {
    %c0_i32 = arith.constant 0 : i32
    %c0_i32_0 = arith.constant 0 : i32
    %c0_i32_1 = arith.constant 0 : i32
    return %c0_i32, %c0_i32_0 : i32, i32
  }
  func.func @transform_3(%arg0: i32) -> (i32, i32) {
    %c0_i32 = arith.constant 0 : i32
    %c0_i32_0 = arith.constant 0 : i32
    return %arg0, %c0_i32 : i32, i32
  }
}

module attributes {stable_mosaic.version = 11 : i64} {
  func.func @_dense_kernel(%arg0: i32, %arg1: i32, %arg2: i32, %arg3: memref<16x32xbf16, #tpu.memory_space<vmem>>, %arg4: memref<32x96xbf16, #tpu.memory_space<vmem>>, %arg5: memref<1x96xf32, #tpu.memory_space<vmem>>, %arg6: memref<16x96xbf16, #tpu.memory_space<vmem>>, %arg7: memref<16x96xf32, #tpu.memory_space<vmem>>) attributes {dimension_semantics = [#tpu.dimension_semantics<parallel>, #tpu.dimension_semantics<parallel>, #tpu.dimension_semantics<arbitrary>], iteration_bounds = array<i64: 1, 1, 1>, scalar_prefetch = 0 : i64, scratch_operands = 1 : i64, tpu.core_type = #tpu.core_type<tc>, window_params = [{transform_indices = @transform_0, window_bounds = array<i64: 16, 32>}, {transform_indices = @transform_1, window_bounds = array<i64: 32, 96>}, {transform_indices = @transform_2, window_bounds = array<i64: 1, 96>}, {transform_indices = @transform_3, window_bounds = array<i64: 16, 96>}]} {
    %c0_i32 = arith.constant 0 : i32
    %0 = arith.cmpi eq, %arg2, %c0_i32 : i32
    %1 = arith.extui %0 : i1 to i32
    %c0_i32_0 = arith.constant 0 : i32
    %2 = arith.cmpi ne, %1, %c0_i32_0 : i32
    scf.if %2 {
      %cst_10 = arith.constant 0.000000e+00 : f32
      %12 = vector.broadcast %cst_10 : f32 to vector<16x96xf32>
      %c0_11 = arith.constant 0 : index
      %c0_12 = arith.constant 0 : index
      %13 = vector.load %arg7[%c0_11, %c0_12] : memref<16x96xf32, #tpu.memory_space<vmem>>, vector<16x96xf32>
      tpu.vector_store %arg7[%c0_11, %c0_12], %12 {strides = array<i32>} : memref<16x96xf32, #tpu.memory_space<vmem>>, vector<16x96xf32>,
    } else {
    }
    %c0 = arith.constant 0 : index
    %c0_1 = arith.constant 0 : index
    %3 = vector.load %arg7[%c0, %c0_1] : memref<16x96xf32, #tpu.memory_space<vmem>>, vector<16x96xf32>
    %c0_2 = arith.constant 0 : index
    %c0_3 = arith.constant 0 : index
    %4 = vector.load %arg3[%c0_2, %c0_3] : memref<16x32xbf16, #tpu.memory_space<vmem>>, vector<16x32xbf16>
    %c0_4 = arith.constant 0 : index
    %c0_5 = arith.constant 0 : index
    %5 = vector.load %arg4[%c0_4, %c0_5] : memref<32x96xbf16, #tpu.memory_space<vmem>>, vector<32x96xbf16>
    %cst = arith.constant dense<0.000000e+00> : vector<16x96xf32>
    %6 = tpu.matmul %4, %5, %cst {dimension_numbers = #tpu.dot_dimension_numbers<[1], [0], [0], [1], [0, 0, 1, 1], [], []>} : vector<16x32xbf16>, vector<32x96xbf16>, vector<16x96xf32> -> vector<16x96xf32>
    %7 = arith.addf %3, %6 : vector<16x96xf32>
    %c0_6 = arith.constant 0 : index
    %c0_7 = arith.constant 0 : index
    %8 = vector.load %arg7[%c0_6, %c0_7] : memref<16x96xf32, #tpu.memory_space<vmem>>, vector<16x96xf32>
    tpu.vector_store %arg7[%c0_6, %c0_7], %7 {strides = array<i32>} : memref<16x96xf32, #tpu.memory_space<vmem>>, vector<16x96xf32>,
    %c0_i32_8 = arith.constant 0 : i32
    %9 = arith.cmpi eq, %arg2, %c0_i32_8 : i32
    %10 = arith.extui %9 : i1 to i32
    %c0_i32_9 = arith.constant 0 : i32
    %11 = arith.cmpi ne, %10, %c0_i32_9 : i32
    scf.if %11 {
      %c0_10 = arith.constant 0 : index
      %c0_11 = arith.constant 0 : index
      %12 = vector.load %arg7[%c0_10, %c0_11] : memref<16x96xf32, #tpu.memory_space<vmem>>, vector<16x96xf32>
      %c0_12 = arith.constant 0 : index
      %c0_13 = arith.constant 0 : index
      %13 = vector.load %arg5[%c0_12, %c0_13] : memref<1x96xf32, #tpu.memory_space<vmem>>, vector<1x96xf32>
      %14 = vector.broadcast %13 : vector<1x96xf32> to vector<16x96xf32>
      %15 = arith.addf %12, %14 : vector<16x96xf32>
      %16 = arith.truncf %15 : vector<16x96xf32> to vector<16x96xbf16>
      %c0_14 = arith.constant 0 : index
      %c0_15 = arith.constant 0 : index
      %17 = vector.load %arg6[%c0_14, %c0_15] : memref<16x96xbf16, #tpu.memory_space<vmem>>, vector<16x96xbf16>
      tpu.vector_store %arg6[%c0_14, %c0_15], %16 {strides = array<i32>} : memref<16x96xbf16, #tpu.memory_space<vmem>>, vector<16x96xbf16>,
    } else {
    }
    return
  }
  func.func @transform_0(%arg0: i32, %arg1: i32, %arg2: i32) -> (i32, i32) {
    %c0_i32 = arith.constant 0 : i32
    return %arg0, %arg2 : i32, i32
  }
  func.func @transform_1(%arg0: i32, %arg1: i32, %arg2: i32) -> (i32, i32) {
    %c0_i32 = arith.constant 0 : i32
    return %arg2, %arg1 : i32, i32
  }
  func.func @transform_2(%arg0: i32, %arg1: i32, %arg2: i32) -> (i32, i32) {
    %c0_i32 = arith.constant 0 : i32
    %c0_i32_0 = arith.constant 0 : i32
    return %c0_i32, %arg1 : i32, i32
  }
  func.func @transform_3(%arg0: i32, %arg1: i32, %arg2: i32) -> (i32, i32) {
    %c0_i32 = arith.constant 0 : i32
    return %arg0, %arg1 : i32, i32
  }
}

module attributes {stable_mosaic.version = 11 : i64} {
  func.func @_attn_kernel(%arg0: i32, %arg1: memref<1x8x96xbf16, #tpu.memory_space<vmem>>, %arg2: memref<1x1x8xf32, #tpu.memory_space<vmem>>, %arg3: memref<1x8x32xbf16, #tpu.memory_space<vmem>>) attributes {dimension_semantics = [#tpu.dimension_semantics<parallel>], iteration_bounds = array<i64: 2>, scalar_prefetch = 0 : i64, scratch_operands = 0 : i64, tpu.core_type = #tpu.core_type<tc>, window_params = [{transform_indices = @transform_0, window_bounds = array<i64: 1, 8, 96>}, {transform_indices = @transform_1, window_bounds = array<i64: 1, 1, 8>}, {transform_indices = @transform_2, window_bounds = array<i64: 1, 8, 32>}]} {
    %c0 = arith.constant 0 : index
    %c0_0 = arith.constant 0 : index
    %c0_1 = arith.constant 0 : index
    %0 = vector.load %arg2[%c0, %c0_0, %c0_1] : memref<1x1x8xf32, #tpu.memory_space<vmem>>, vector<1x1x8xf32>
    %1 = vector.shape_cast %0 : vector<1x1x8xf32> to vector<1x8xf32>
    %c0_2 = arith.constant 0 : index
    %c0_3 = arith.constant 0 : index
    %c0_4 = arith.constant 0 : index
    %2 = vector.load %arg1[%c0_2, %c0_3, %c0_4] : memref<1x8x96xbf16, #tpu.memory_space<vmem>>, vector<1x8x16xbf16>
    %3 = vector.shape_cast %2 : vector<1x8x16xbf16> to vector<8x16xbf16>
    %c0_5 = arith.constant 0 : index
    %c0_6 = arith.constant 0 : index
    %c32 = arith.constant 32 : index
    %4 = vector.load %arg1[%c0_5, %c0_6, %c32] : memref<1x8x96xbf16, #tpu.memory_space<vmem>>, vector<1x8x16xbf16>
    %5 = vector.shape_cast %4 : vector<1x8x16xbf16> to vector<8x16xbf16>
    %c0_7 = arith.constant 0 : index
    %c0_8 = arith.constant 0 : index
    %c64 = arith.constant 64 : index
    %6 = vector.load %arg1[%c0_7, %c0_8, %c64] : memref<1x8x96xbf16, #tpu.memory_space<vmem>>, vector<1x8x16xbf16>
    %7 = vector.shape_cast %6 : vector<1x8x16xbf16> to vector<8x16xbf16>
    %cst = arith.constant dense<0.000000e+00> : vector<8x8xf32>
    %8 = tpu.matmul %3, %5, %cst {dimension_numbers = #tpu.dot_dimension_numbers<[1], [1], [0], [0], [0, 0, 1, 0], [], []>} : vector<8x16xbf16>, vector<8x16xbf16>, vector<8x8xf32> -> vector<8x8xf32>
    %cst_9 = arith.constant 2.500000e-01 : f32
    %9 = vector.broadcast %cst_9 : f32 to vector<8x8xf32>
    %10 = arith.mulf %8, %9 : vector<8x8xf32>
    %11 = vector.broadcast %1 : vector<1x8xf32> to vector<8x8xf32>
    %12 = arith.addf %10, %11 : vector<8x8xf32>
    %cst_10 = arith.constant dense<0xFF800000> : vector<8xf32>
    %13 = vector.multi_reduction <maximumf>, %12, %cst_10 [1] : vector<8x8xf32> to vector<8xf32>
    %14 = vector.shape_cast %13 : vector<8xf32> to vector<8x1xf32>
    %15 = vector.broadcast %14 : vector<8x1xf32> to vector<8x8xf32>
    %16 = arith.subf %12, %15 : vector<8x8xf32>
    %17 = math.exp %16 : vector<8x8xf32>
    %cst_11 = arith.constant dense<0.000000e+00> : vector<8xf32>
    %18 = vector.multi_reduction <add>, %17, %cst_11 [1] : vector<8x8xf32> to vector<8xf32>
    %19 = vector.shape_cast %18 : vector<8xf32> to vector<8x1xf32>
    %20 = vector.broadcast %19 : vector<8x1xf32> to vector<8x8xf32>
    %21 = arith.divf %17, %20 : vector<8x8xf32>
    %22 = arith.truncf %21 : vector<8x8xf32> to vector<8x8xbf16>
    %cst_12 = arith.constant dense<0.000000e+00> : vector<8x16xf32>
    %23 = tpu.matmul %22, %7, %cst_12 {dimension_numbers = #tpu.dot_dimension_numbers<[1], [0], [0], [1], [0, 0, 1, 1], [], []>} : vector<8x8xbf16>, vector<8x16xbf16>, vector<8x16xf32> -> vector<8x16xf32>
    %c0_13 = arith.constant 0 : index
    %c0_14 = arith.constant 0 : index
    %c16 = arith.constant 16 : index
    %24 = vector.load %arg1[%c0_13, %c0_14, %c16] : memref<1x8x96xbf16, #tpu.memory_space<vmem>>, vector<1x8x16xbf16>
    %25 = vector.shape_cast %24 : vector<1x8x16xbf16> to vector<8x16xbf16>
    %c0_15 = arith.constant 0 : index
    %c0_16 = arith.constant 0 : index
    %c48 = arith.constant 48 : index
    %26 = vector.load %arg1[%c0_15, %c0_16, %c48] : memref<1x8x96xbf16, #tpu.memory_space<vmem>>, vector<1x8x16xbf16>
    %27 = vector.shape_cast %26 : vector<1x8x16xbf16> to vector<8x16xbf16>
    %c0_17 = arith.constant 0 : index
    %c0_18 = arith.constant 0 : index
    %c80 = arith.constant 80 : index
    %28 = vector.load %arg1[%c0_17, %c0_18, %c80] : memref<1x8x96xbf16, #tpu.memory_space<vmem>>, vector<1x8x16xbf16>
    %29 = vector.shape_cast %28 : vector<1x8x16xbf16> to vector<8x16xbf16>
    %cst_19 = arith.constant dense<0.000000e+00> : vector<8x8xf32>
    %30 = tpu.matmul %25, %27, %cst_19 {dimension_numbers = #tpu.dot_dimension_numbers<[1], [1], [0], [0], [0, 0, 1, 0], [], []>} : vector<8x16xbf16>, vector<8x16xbf16>, vector<8x8xf32> -> vector<8x8xf32>
    %cst_20 = arith.constant 2.500000e-01 : f32
    %31 = vector.broadcast %cst_20 : f32 to vector<8x8xf32>
    %32 = arith.mulf %30, %31 : vector<8x8xf32>
    %33 = vector.broadcast %1 : vector<1x8xf32> to vector<8x8xf32>
    %34 = arith.addf %32, %33 : vector<8x8xf32>
    %cst_21 = arith.constant dense<0xFF800000> : vector<8xf32>
    %35 = vector.multi_reduction <maximumf>, %34, %cst_21 [1] : vector<8x8xf32> to vector<8xf32>
    %36 = vector.shape_cast %35 : vector<8xf32> to vector<8x1xf32>
    %37 = vector.broadcast %36 : vector<8x1xf32> to vector<8x8xf32>
    %38 = arith.subf %34, %37 : vector<8x8xf32>
    %39 = math.exp %38 : vector<8x8xf32>
    %cst_22 = arith.constant dense<0.000000e+00> : vector<8xf32>
    %40 = vector.multi_reduction <add>, %39, %cst_22 [1] : vector<8x8xf32> to vector<8xf32>
    %41 = vector.shape_cast %40 : vector<8xf32> to vector<8x1xf32>
    %42 = vector.broadcast %41 : vector<8x1xf32> to vector<8x8xf32>
    %43 = arith.divf %39, %42 : vector<8x8xf32>
    %44 = arith.truncf %43 : vector<8x8xf32> to vector<8x8xbf16>
    %cst_23 = arith.constant dense<0.000000e+00> : vector<8x16xf32>
    %45 = tpu.matmul %44, %29, %cst_23 {dimension_numbers = #tpu.dot_dimension_numbers<[1], [0], [0], [1], [0, 0, 1, 1], [], []>} : vector<8x8xbf16>, vector<8x16xbf16>, vector<8x16xf32> -> vector<8x16xf32>
    %46 = tpu.concatenate %23, %45 in 1 : vector<8x16xf32>, vector<8x16xf32> -> vector<8x32xf32>
    %47 = arith.truncf %46 : vector<8x32xf32> to vector<8x32xbf16>
    %c0_24 = arith.constant 0 : index
    %c0_25 = arith.constant 0 : index
    %c0_26 = arith.constant 0 : index
    %48 = vector.load %arg3[%c0_24, %c0_25, %c0_26] : memref<1x8x32xbf16, #tpu.memory_space<vmem>>, vector<1x8x32xbf16>
    %49 = vector.shape_cast %48 : vector<1x8x32xbf16> to vector<8x32xbf16>
    %50 = vector.shape_cast %47 : vector<8x32xbf16> to vector<1x8x32xbf16>
    tpu.vector_store %arg3[%c0_24, %c0_25, %c0_26], %50 {strides = array<i32>} : memref<1x8x32xbf16, #tpu.memory_space<vmem>>, vector<1x8x32xbf16>,
    return
  }
  func.func @transform_0(%arg0: i32) -> (i32, i32, i32) {
    %c0_i32 = arith.constant 0 : i32
    %c0_i32_0 = arith.constant 0 : i32
    %c0_i32_1 = arith.constant 0 : i32
    return %arg0, %c0_i32, %c0_i32_0 : i32, i32, i32
  }
  func.func @transform_1(%arg0: i32) -> (i32, i32, i32) {
    %c0_i32 = arith.constant 0 : i32
    %c0_i32_0 = arith.constant 0 : i32
    %c0_i32_1 = arith.constant 0 : i32
    return %arg0, %c0_i32, %c0_i32_0 : i32, i32, i32
  }
  func.func @transform_2(%arg0: i32) -> (i32, i32, i32) {
    %c0_i32 = arith.constant 0 : i32
    %c0_i32_0 = arith.constant 0 : i32
    %c0_i32_1 = arith.constant 0 : i32
    return %arg0, %c0_i32, %c0_i32_0 : i32, i32, i32
  }
}

module attributes {stable_mosaic.version = 11 : i64} {
  func.func @_dense_ln_kernel(%arg0: i32, %arg1: i32, %arg2: memref<16x32xbf16, #tpu.memory_space<vmem>>, %arg3: memref<32x32xbf16, #tpu.memory_space<vmem>>, %arg4: memref<1x32xf32, #tpu.memory_space<vmem>>, %arg5: memref<16x32xbf16, #tpu.memory_space<vmem>>, %arg6: memref<1x32xf32, #tpu.memory_space<vmem>>, %arg7: memref<1x32xf32, #tpu.memory_space<vmem>>, %arg8: memref<16x32xbf16, #tpu.memory_space<vmem>>, %arg9: memref<16x32xf32, #tpu.memory_space<vmem>>) attributes {dimension_semantics = [#tpu.dimension_semantics<parallel>, #tpu.dimension_semantics<arbitrary>], iteration_bounds = array<i64: 1, 1>, scalar_prefetch = 0 : i64, scratch_operands = 1 : i64, tpu.core_type = #tpu.core_type<tc>, window_params = [{transform_indices = @transform_0, window_bounds = array<i64: 16, 32>}, {transform_indices = @transform_1, window_bounds = array<i64: 32, 32>}, {pipeline_mode = #tpu.pipeline_mode<synchronous>, transform_indices = @transform_2, window_bounds = array<i64: 1, 32>}, {transform_indices = @transform_3, window_bounds = array<i64: 16, 32>}, {pipeline_mode = #tpu.pipeline_mode<synchronous>, transform_indices = @transform_4, window_bounds = array<i64: 1, 32>}, {pipeline_mode = #tpu.pipeline_mode<synchronous>, transform_indices = @transform_5, window_bounds = array<i64: 1, 32>}, {transform_indices = @transform_6, window_bounds = array<i64: 16, 32>}]} {
    %c0_i32 = arith.constant 0 : i32
    %0 = arith.cmpi eq, %arg1, %c0_i32 : i32
    %1 = arith.extui %0 : i1 to i32
    %c0_i32_0 = arith.constant 0 : i32
    %2 = arith.cmpi ne, %1, %c0_i32_0 : i32
    scf.if %2 {
      %cst_10 = arith.constant 0.000000e+00 : f32
      %12 = vector.broadcast %cst_10 : f32 to vector<16x32xf32>
      %c0_11 = arith.constant 0 : index
      %c0_12 = arith.constant 0 : index
      %13 = vector.load %arg9[%c0_11, %c0_12] : memref<16x32xf32, #tpu.memory_space<vmem>>, vector<16x32xf32>
      tpu.vector_store %arg9[%c0_11, %c0_12], %12 {strides = array<i32>} : memref<16x32xf32, #tpu.memory_space<vmem>>, vector<16x32xf32>,
    } else {
    }
    %c0 = arith.constant 0 : index
    %c0_1 = arith.constant 0 : index
    %3 = vector.load %arg9[%c0, %c0_1] : memref<16x32xf32, #tpu.memory_space<vmem>>, vector<16x32xf32>
    %c0_2 = arith.constant 0 : index
    %c0_3 = arith.constant 0 : index
    %4 = vector.load %arg2[%c0_2, %c0_3] : memref<16x32xbf16, #tpu.memory_space<vmem>>, vector<16x32xbf16>
    %c0_4 = arith.constant 0 : index
    %c0_5 = arith.constant 0 : index
    %5 = vector.load %arg3[%c0_4, %c0_5] : memref<32x32xbf16, #tpu.memory_space<vmem>>, vector<32x32xbf16>
    %cst = arith.constant dense<0.000000e+00> : vector<16x32xf32>
    %6 = tpu.matmul %4, %5, %cst {dimension_numbers = #tpu.dot_dimension_numbers<[1], [0], [0], [1], [0, 0, 1, 1], [], []>} : vector<16x32xbf16>, vector<32x32xbf16>, vector<16x32xf32> -> vector<16x32xf32>
    %7 = arith.addf %3, %6 : vector<16x32xf32>
    %c0_6 = arith.constant 0 : index
    %c0_7 = arith.constant 0 : index
    %8 = vector.load %arg9[%c0_6, %c0_7] : memref<16x32xf32, #tpu.memory_space<vmem>>, vector<16x32xf32>
    tpu.vector_store %arg9[%c0_6, %c0_7], %7 {strides = array<i32>} : memref<16x32xf32, #tpu.memory_space<vmem>>, vector<16x32xf32>,
    %c0_i32_8 = arith.constant 0 : i32
    %9 = arith.cmpi eq, %arg1, %c0_i32_8 : i32
    %10 = arith.extui %9 : i1 to i32
    %c0_i32_9 = arith.constant 0 : i32
    %11 = arith.cmpi ne, %10, %c0_i32_9 : i32
    scf.if %11 {
      %c0_10 = arith.constant 0 : index
      %c0_11 = arith.constant 0 : index
      %12 = vector.load %arg9[%c0_10, %c0_11] : memref<16x32xf32, #tpu.memory_space<vmem>>, vector<16x32xf32>
      %c0_12 = arith.constant 0 : index
      %c0_13 = arith.constant 0 : index
      %13 = vector.load %arg4[%c0_12, %c0_13] : memref<1x32xf32, #tpu.memory_space<vmem>>, vector<1x32xf32>
      %14 = vector.broadcast %13 : vector<1x32xf32> to vector<16x32xf32>
      %15 = arith.addf %12, %14 : vector<16x32xf32>
      %c0_14 = arith.constant 0 : index
      %c0_15 = arith.constant 0 : index
      %16 = vector.load %arg5[%c0_14, %c0_15] : memref<16x32xbf16, #tpu.memory_space<vmem>>, vector<16x32xbf16>
      %17 = arith.extf %16 : vector<16x32xbf16> to vector<16x32xf32>
      %18 = arith.addf %15, %17 : vector<16x32xf32>
      %cst_16 = arith.constant dense<0.000000e+00> : vector<16xf32>
      %19 = vector.multi_reduction <add>, %18, %cst_16 [1] : vector<16x32xf32> to vector<16xf32>
      %20 = vector.shape_cast %19 : vector<16xf32> to vector<16x1xf32>
      %cst_17 = arith.constant 3.200000e+01 : f32
      %21 = vector.broadcast %cst_17 : f32 to vector<16x1xf32>
      %22 = arith.divf %20, %21 : vector<16x1xf32>
      %23 = vector.broadcast %22 : vector<16x1xf32> to vector<16x32xf32>
      %24 = arith.subf %18, %23 : vector<16x32xf32>
      %25 = arith.mulf %24, %24 : vector<16x32xf32>
      %cst_18 = arith.constant dense<0.000000e+00> : vector<16xf32>
      %26 = vector.multi_reduction <add>, %25, %cst_18 [1] : vector<16x32xf32> to vector<16xf32>
      %27 = vector.shape_cast %26 : vector<16xf32> to vector<16x1xf32>
      %cst_19 = arith.constant 3.200000e+01 : f32
      %28 = vector.broadcast %cst_19 : f32 to vector<16x1xf32>
      %29 = arith.divf %27, %28 : vector<16x1xf32>
      %cst_20 = arith.constant 9.99999996E-13 : f32
      %30 = vector.broadcast %cst_20 : f32 to vector<16x1xf32>
      %31 = arith.addf %29, %30 : vector<16x1xf32>
      %32 = math.rsqrt %31 : vector<16x1xf32>
      %33 = vector.broadcast %32 : vector<16x1xf32> to vector<16x32xf32>
      %34 = arith.mulf %24, %33 : vector<16x32xf32>
      %c0_21 = arith.constant 0 : index
      %c0_22 = arith.constant 0 : index
      %35 = vector.load %arg6[%c0_21, %c0_22] : memref<1x32xf32, #tpu.memory_space<vmem>>, vector<1x32xf32>
      %36 = vector.broadcast %35 : vector<1x32xf32> to vector<16x32xf32>
      %37 = arith.mulf %34, %36 : vector<16x32xf32>
      %c0_23 = arith.constant 0 : index
      %c0_24 = arith.constant 0 : index
      %38 = vector.load %arg7[%c0_23, %c0_24] : memref<1x32xf32, #tpu.memory_space<vmem>>, vector<1x32xf32>
      %39 = vector.broadcast %38 : vector<1x32xf32> to vector<16x32xf32>
      %40 = arith.addf %37, %39 : vector<16x32xf32>
      %41 = arith.truncf %40 : vector<16x32xf32> to vector<16x32xbf16>
      %c0_25 = arith.constant 0 : index
      %c0_26 = arith.constant 0 : index
      %42 = vector.load %arg8[%c0_25, %c0_26] : memref<16x32xbf16, #tpu.memory_space<vmem>>, vector<16x32xbf16>
      tpu.vector_store %arg8[%c0_25, %c0_26], %41 {strides = array<i32>} : memref<16x32xbf16, #tpu.memory_space<vmem>>, vector<16x32xbf16>,
    } else {
    }
    return
  }
  func.func @transform_0(%arg0: i32, %arg1: i32) -> (i32, i32) {
    %c0_i32 = arith.constant 0 : i32
    return %arg0, %arg1 : i32, i32
  }
  func.func @transform_1(%arg0: i32, %arg1: i32) -> (i32, i32) {
    %c0_i32 = arith.constant 0 : i32
    %c0_i32_0 = arith.constant 0 : i32
    return %arg1, %c0_i32 : i32, i32
  }
  func.func @transform_2(%arg0: i32, %arg1: i32) -> (i32, i32) {
    %c0_i32 = arith.constant 0 : i32
    %c0_i32_0 = arith.constant 0 : i32
    %c0_i32_1 = arith.constant 0 : i32
    return %c0_i32, %c0_i32_0 : i32, i32
  }
  func.func @transform_3(%arg0: i32, %arg1: i32) -> (i32, i32) {
    %c0_i32 = arith.constant 0 : i32
    %c0_i32_0 = arith.constant 0 : i32
    return %arg0, %c0_i32 : i32, i32
  }
  func.func @transform_4(%arg0: i32, %arg1: i32) -> (i32, i32) {
    %c0_i32 = arith.constant 0 : i32
    %c0_i32_0 = arith.constant 0 : i32
    %c0_i32_1 = arith.constant 0 : i32
    return %c0_i32, %c0_i32_0 : i32, i32
  }
  func.func @transform_5(%arg0: i32, %arg1: i32) -> (i32, i32) {
    %c0_i32 = arith.constant 0 : i32
    %c0_i32_0 = arith.constant 0 : i32
    %c0_i32_1 = arith.constant 0 : i32
    return %c0_i32, %c0_i32_0 : i32, i32
  }
  func.func @transform_6(%arg0: i32, %arg1: i32) -> (i32, i32) {
    %c0_i32 = arith.constant 0 : i32
    %c0_i32_0 = arith.constant 0 : i32
    return %arg0, %c0_i32 : i32, i32
  }
}

module attributes {stable_mosaic.version = 11 : i64} {
  func.func @_dense_kernel(%arg0: i32, %arg1: i32, %arg2: i32, %arg3: memref<16x32xbf16, #tpu.memory_space<vmem>>, %arg4: memref<32x64xbf16, #tpu.memory_space<vmem>>, %arg5: memref<1x64xf32, #tpu.memory_space<vmem>>, %arg6: memref<16x64xbf16, #tpu.memory_space<vmem>>, %arg7: memref<16x64xf32, #tpu.memory_space<vmem>>) attributes {dimension_semantics = [#tpu.dimension_semantics<parallel>, #tpu.dimension_semantics<parallel>, #tpu.dimension_semantics<arbitrary>], iteration_bounds = array<i64: 1, 1, 1>, scalar_prefetch = 0 : i64, scratch_operands = 1 : i64, tpu.core_type = #tpu.core_type<tc>, window_params = [{transform_indices = @transform_0, window_bounds = array<i64: 16, 32>}, {transform_indices = @transform_1, window_bounds = array<i64: 32, 64>}, {transform_indices = @transform_2, window_bounds = array<i64: 1, 64>}, {transform_indices = @transform_3, window_bounds = array<i64: 16, 64>}]} {
    %c0_i32 = arith.constant 0 : i32
    %0 = arith.cmpi eq, %arg2, %c0_i32 : i32
    %1 = arith.extui %0 : i1 to i32
    %c0_i32_0 = arith.constant 0 : i32
    %2 = arith.cmpi ne, %1, %c0_i32_0 : i32
    scf.if %2 {
      %cst_10 = arith.constant 0.000000e+00 : f32
      %12 = vector.broadcast %cst_10 : f32 to vector<16x64xf32>
      %c0_11 = arith.constant 0 : index
      %c0_12 = arith.constant 0 : index
      %13 = vector.load %arg7[%c0_11, %c0_12] : memref<16x64xf32, #tpu.memory_space<vmem>>, vector<16x64xf32>
      tpu.vector_store %arg7[%c0_11, %c0_12], %12 {strides = array<i32>} : memref<16x64xf32, #tpu.memory_space<vmem>>, vector<16x64xf32>,
    } else {
    }
    %c0 = arith.constant 0 : index
    %c0_1 = arith.constant 0 : index
    %3 = vector.load %arg7[%c0, %c0_1] : memref<16x64xf32, #tpu.memory_space<vmem>>, vector<16x64xf32>
    %c0_2 = arith.constant 0 : index
    %c0_3 = arith.constant 0 : index
    %4 = vector.load %arg3[%c0_2, %c0_3] : memref<16x32xbf16, #tpu.memory_space<vmem>>, vector<16x32xbf16>
    %c0_4 = arith.constant 0 : index
    %c0_5 = arith.constant 0 : index
    %5 = vector.load %arg4[%c0_4, %c0_5] : memref<32x64xbf16, #tpu.memory_space<vmem>>, vector<32x64xbf16>
    %cst = arith.constant dense<0.000000e+00> : vector<16x64xf32>
    %6 = tpu.matmul %4, %5, %cst {dimension_numbers = #tpu.dot_dimension_numbers<[1], [0], [0], [1], [0, 0, 1, 1], [], []>} : vector<16x32xbf16>, vector<32x64xbf16>, vector<16x64xf32> -> vector<16x64xf32>
    %7 = arith.addf %3, %6 : vector<16x64xf32>
    %c0_6 = arith.constant 0 : index
    %c0_7 = arith.constant 0 : index
    %8 = vector.load %arg7[%c0_6, %c0_7] : memref<16x64xf32, #tpu.memory_space<vmem>>, vector<16x64xf32>
    tpu.vector_store %arg7[%c0_6, %c0_7], %7 {strides = array<i32>} : memref<16x64xf32, #tpu.memory_space<vmem>>, vector<16x64xf32>,
    %c0_i32_8 = arith.constant 0 : i32
    %9 = arith.cmpi eq, %arg2, %c0_i32_8 : i32
    %10 = arith.extui %9 : i1 to i32
    %c0_i32_9 = arith.constant 0 : i32
    %11 = arith.cmpi ne, %10, %c0_i32_9 : i32
    scf.if %11 {
      %c0_10 = arith.constant 0 : index
      %c0_11 = arith.constant 0 : index
      %12 = vector.load %arg7[%c0_10, %c0_11] : memref<16x64xf32, #tpu.memory_space<vmem>>, vector<16x64xf32>
      %c0_12 = arith.constant 0 : index
      %c0_13 = arith.constant 0 : index
      %13 = vector.load %arg5[%c0_12, %c0_13] : memref<1x64xf32, #tpu.memory_space<vmem>>, vector<1x64xf32>
      %14 = vector.broadcast %13 : vector<1x64xf32> to vector<16x64xf32>
      %15 = arith.addf %12, %14 : vector<16x64xf32>
      %cst_14 = arith.constant 5.000000e-01 : f32
      %16 = vector.broadcast %cst_14 : f32 to vector<16x64xf32>
      %17 = arith.mulf %16, %15 : vector<16x64xf32>
      %cst_15 = arith.constant 0.707106769 : f32
      %18 = vector.broadcast %cst_15 : f32 to vector<16x64xf32>
      %19 = arith.mulf %15, %18 : vector<16x64xf32>
      %20 = math.erf %19 : vector<16x64xf32>
      %cst_16 = arith.constant 1.000000e+00 : f32
      %21 = vector.broadcast %cst_16 : f32 to vector<16x64xf32>
      %22 = arith.addf %21, %20 : vector<16x64xf32>
      %23 = arith.mulf %17, %22 : vector<16x64xf32>
      %24 = arith.truncf %23 : vector<16x64xf32> to vector<16x64xbf16>
      %c0_17 = arith.constant 0 : index
      %c0_18 = arith.constant 0 : index
      %25 = vector.load %arg6[%c0_17, %c0_18] : memref<16x64xbf16, #tpu.memory_space<vmem>>, vector<16x64xbf16>
      tpu.vector_store %arg6[%c0_17, %c0_18], %24 {strides = array<i32>} : memref<16x64xbf16, #tpu.memory_space<vmem>>, vector<16x64xbf16>,
    } else {
    }
    return
  }
  func.func @transform_0(%arg0: i32, %arg1: i32, %arg2: i32) -> (i32, i32) {
    %c0_i32 = arith.constant 0 : i32
    return %arg0, %arg2 : i32, i32
  }
  func.func @transform_1(%arg0: i32, %arg1: i32, %arg2: i32) -> (i32, i32) {
    %c0_i32 = arith.constant 0 : i32
    return %arg2, %arg1 : i32, i32
  }
  func.func @transform_2(%arg0: i32, %arg1: i32, %arg2: i32) -> (i32, i32) {
    %c0_i32 = arith.constant 0 : i32
    %c0_i32_0 = arith.constant 0 : i32
    return %c0_i32, %arg1 : i32, i32
  }
  func.func @transform_3(%arg0: i32, %arg1: i32, %arg2: i32) -> (i32, i32) {
    %c0_i32 = arith.constant 0 : i32
    return %arg0, %arg1 : i32, i32
  }
}

module attributes {stable_mosaic.version = 11 : i64} {
  func.func @_dense_ln_kernel(%arg0: i32, %arg1: i32, %arg2: memref<16x64xbf16, #tpu.memory_space<vmem>>, %arg3: memref<64x32xbf16, #tpu.memory_space<vmem>>, %arg4: memref<1x32xf32, #tpu.memory_space<vmem>>, %arg5: memref<16x32xbf16, #tpu.memory_space<vmem>>, %arg6: memref<1x32xf32, #tpu.memory_space<vmem>>, %arg7: memref<1x32xf32, #tpu.memory_space<vmem>>, %arg8: memref<16x32xbf16, #tpu.memory_space<vmem>>, %arg9: memref<16x32xf32, #tpu.memory_space<vmem>>) attributes {dimension_semantics = [#tpu.dimension_semantics<parallel>, #tpu.dimension_semantics<arbitrary>], iteration_bounds = array<i64: 1, 1>, scalar_prefetch = 0 : i64, scratch_operands = 1 : i64, tpu.core_type = #tpu.core_type<tc>, window_params = [{transform_indices = @transform_0, window_bounds = array<i64: 16, 64>}, {transform_indices = @transform_1, window_bounds = array<i64: 64, 32>}, {pipeline_mode = #tpu.pipeline_mode<synchronous>, transform_indices = @transform_2, window_bounds = array<i64: 1, 32>}, {transform_indices = @transform_3, window_bounds = array<i64: 16, 32>}, {pipeline_mode = #tpu.pipeline_mode<synchronous>, transform_indices = @transform_4, window_bounds = array<i64: 1, 32>}, {pipeline_mode = #tpu.pipeline_mode<synchronous>, transform_indices = @transform_5, window_bounds = array<i64: 1, 32>}, {transform_indices = @transform_6, window_bounds = array<i64: 16, 32>}]} {
    %c0_i32 = arith.constant 0 : i32
    %0 = arith.cmpi eq, %arg1, %c0_i32 : i32
    %1 = arith.extui %0 : i1 to i32
    %c0_i32_0 = arith.constant 0 : i32
    %2 = arith.cmpi ne, %1, %c0_i32_0 : i32
    scf.if %2 {
      %cst_10 = arith.constant 0.000000e+00 : f32
      %12 = vector.broadcast %cst_10 : f32 to vector<16x32xf32>
      %c0_11 = arith.constant 0 : index
      %c0_12 = arith.constant 0 : index
      %13 = vector.load %arg9[%c0_11, %c0_12] : memref<16x32xf32, #tpu.memory_space<vmem>>, vector<16x32xf32>
      tpu.vector_store %arg9[%c0_11, %c0_12], %12 {strides = array<i32>} : memref<16x32xf32, #tpu.memory_space<vmem>>, vector<16x32xf32>,
    } else {
    }
    %c0 = arith.constant 0 : index
    %c0_1 = arith.constant 0 : index
    %3 = vector.load %arg9[%c0, %c0_1] : memref<16x32xf32, #tpu.memory_space<vmem>>, vector<16x32xf32>
    %c0_2 = arith.constant 0 : index
    %c0_3 = arith.constant 0 : index
    %4 = vector.load %arg2[%c0_2, %c0_3] : memref<16x64xbf16, #tpu.memory_space<vmem>>, vector<16x64xbf16>
    %c0_4 = arith.constant 0 : index
    %c0_5 = arith.constant 0 : index
    %5 = vector.load %arg3[%c0_4, %c0_5] : memref<64x32xbf16, #tpu.memory_space<vmem>>, vector<64x32xbf16>
    %cst = arith.constant dense<0.000000e+00> : vector<16x32xf32>
    %6 = tpu.matmul %4, %5, %cst {dimension_numbers = #tpu.dot_dimension_numbers<[1], [0], [0], [1], [0, 0, 1, 1], [], []>} : vector<16x64xbf16>, vector<64x32xbf16>, vector<16x32xf32> -> vector<16x32xf32>
    %7 = arith.addf %3, %6 : vector<16x32xf32>
    %c0_6 = arith.constant 0 : index
    %c0_7 = arith.constant 0 : index
    %8 = vector.load %arg9[%c0_6, %c0_7] : memref<16x32xf32, #tpu.memory_space<vmem>>, vector<16x32xf32>
    tpu.vector_store %arg9[%c0_6, %c0_7], %7 {strides = array<i32>} : memref<16x32xf32, #tpu.memory_space<vmem>>, vector<16x32xf32>,
    %c0_i32_8 = arith.constant 0 : i32
    %9 = arith.cmpi eq, %arg1, %c0_i32_8 : i32
    %10 = arith.extui %9 : i1 to i32
    %c0_i32_9 = arith.constant 0 : i32
    %11 = arith.cmpi ne, %10, %c0_i32_9 : i32
    scf.if %11 {
      %c0_10 = arith.constant 0 : index
      %c0_11 = arith.constant 0 : index
      %12 = vector.load %arg9[%c0_10, %c0_11] : memref<16x32xf32, #tpu.memory_space<vmem>>, vector<16x32xf32>
      %c0_12 = arith.constant 0 : index
      %c0_13 = arith.constant 0 : index
      %13 = vector.load %arg4[%c0_12, %c0_13] : memref<1x32xf32, #tpu.memory_space<vmem>>, vector<1x32xf32>
      %14 = vector.broadcast %13 : vector<1x32xf32> to vector<16x32xf32>
      %15 = arith.addf %12, %14 : vector<16x32xf32>
      %c0_14 = arith.constant 0 : index
      %c0_15 = arith.constant 0 : index
      %16 = vector.load %arg5[%c0_14, %c0_15] : memref<16x32xbf16, #tpu.memory_space<vmem>>, vector<16x32xbf16>
      %17 = arith.extf %16 : vector<16x32xbf16> to vector<16x32xf32>
      %18 = arith.addf %15, %17 : vector<16x32xf32>
      %cst_16 = arith.constant dense<0.000000e+00> : vector<16xf32>
      %19 = vector.multi_reduction <add>, %18, %cst_16 [1] : vector<16x32xf32> to vector<16xf32>
      %20 = vector.shape_cast %19 : vector<16xf32> to vector<16x1xf32>
      %cst_17 = arith.constant 3.200000e+01 : f32
      %21 = vector.broadcast %cst_17 : f32 to vector<16x1xf32>
      %22 = arith.divf %20, %21 : vector<16x1xf32>
      %23 = vector.broadcast %22 : vector<16x1xf32> to vector<16x32xf32>
      %24 = arith.subf %18, %23 : vector<16x32xf32>
      %25 = arith.mulf %24, %24 : vector<16x32xf32>
      %cst_18 = arith.constant dense<0.000000e+00> : vector<16xf32>
      %26 = vector.multi_reduction <add>, %25, %cst_18 [1] : vector<16x32xf32> to vector<16xf32>
      %27 = vector.shape_cast %26 : vector<16xf32> to vector<16x1xf32>
      %cst_19 = arith.constant 3.200000e+01 : f32
      %28 = vector.broadcast %cst_19 : f32 to vector<16x1xf32>
      %29 = arith.divf %27, %28 : vector<16x1xf32>
      %cst_20 = arith.constant 9.99999996E-13 : f32
      %30 = vector.broadcast %cst_20 : f32 to vector<16x1xf32>
      %31 = arith.addf %29, %30 : vector<16x1xf32>
      %32 = math.rsqrt %31 : vector<16x1xf32>
      %33 = vector.broadcast %32 : vector<16x1xf32> to vector<16x32xf32>
      %34 = arith.mulf %24, %33 : vector<16x32xf32>
      %c0_21 = arith.constant 0 : index
      %c0_22 = arith.constant 0 : index
      %35 = vector.load %arg6[%c0_21, %c0_22] : memref<1x32xf32, #tpu.memory_space<vmem>>, vector<1x32xf32>
      %36 = vector.broadcast %35 : vector<1x32xf32> to vector<16x32xf32>
      %37 = arith.mulf %34, %36 : vector<16x32xf32>
      %c0_23 = arith.constant 0 : index
      %c0_24 = arith.constant 0 : index
      %38 = vector.load %arg7[%c0_23, %c0_24] : memref<1x32xf32, #tpu.memory_space<vmem>>, vector<1x32xf32>
      %39 = vector.broadcast %38 : vector<1x32xf32> to vector<16x32xf32>
      %40 = arith.addf %37, %39 : vector<16x32xf32>
      %41 = arith.truncf %40 : vector<16x32xf32> to vector<16x32xbf16>
      %c0_25 = arith.constant 0 : index
      %c0_26 = arith.constant 0 : index
      %42 = vector.load %arg8[%c0_25, %c0_26] : memref<16x32xbf16, #tpu.memory_space<vmem>>, vector<16x32xbf16>
      tpu.vector_store %arg8[%c0_25, %c0_26], %41 {strides = array<i32>} : memref<16x32xbf16, #tpu.memory_space<vmem>>, vector<16x32xbf16>,
    } else {
    }
    return
  }
  func.func @transform_0(%arg0: i32, %arg1: i32) -> (i32, i32) {
    %c0_i32 = arith.constant 0 : i32
    return %arg0, %arg1 : i32, i32
  }
  func.func @transform_1(%arg0: i32, %arg1: i32) -> (i32, i32) {
    %c0_i32 = arith.constant 0 : i32
    %c0_i32_0 = arith.constant 0 : i32
    return %arg1, %c0_i32 : i32, i32
  }
  func.func @transform_2(%arg0: i32, %arg1: i32) -> (i32, i32) {
    %c0_i32 = arith.constant 0 : i32
    %c0_i32_0 = arith.constant 0 : i32
    %c0_i32_1 = arith.constant 0 : i32
    return %c0_i32, %c0_i32_0 : i32, i32
  }
  func.func @transform_3(%arg0: i32, %arg1: i32) -> (i32, i32) {
    %c0_i32 = arith.constant 0 : i32
    %c0_i32_0 = arith.constant 0 : i32
    return %arg0, %c0_i32 : i32, i32
  }
  func.func @transform_4(%arg0: i32, %arg1: i32) -> (i32, i32) {
    %c0_i32 = arith.constant 0 : i32
    %c0_i32_0 = arith.constant 0 : i32
    %c0_i32_1 = arith.constant 0 : i32
    return %c0_i32, %c0_i32_0 : i32, i32
  }
  func.func @transform_5(%arg0: i32, %arg1: i32) -> (i32, i32) {
    %c0_i32 = arith.constant 0 : i32
    %c0_i32_0 = arith.constant 0 : i32
    %c0_i32_1 = arith.constant 0 : i32
    return %c0_i32, %c0_i32_0 : i32, i32
  }
  func.func @transform_6(%arg0: i32, %arg1: i32) -> (i32, i32) {
    %c0_i32 = arith.constant 0 : i32
    %c0_i32_0 = arith.constant 0 : i32
    return %arg0, %c0_i32 : i32, i32
  }
}

module attributes {stable_mosaic.version = 11 : i64} {
  func.func @_proj_lse_kernel(%arg0: i32, %arg1: i32, %arg2: memref<16x32xbf16, #tpu.memory_space<vmem>>, %arg3: memref<128x32xbf16, #tpu.memory_space<vmem>>, %arg4: memref<1x128xf32, #tpu.memory_space<vmem>>, %arg5: memref<16x1xf32, #tpu.memory_space<vmem>>, %arg6: memref<16x1xf32, #tpu.memory_space<vmem>>, %arg7: memref<16x1xf32, #tpu.memory_space<vmem>>) attributes {dimension_semantics = [#tpu.dimension_semantics<parallel>, #tpu.dimension_semantics<arbitrary>], iteration_bounds = array<i64: 1, 1>, scalar_prefetch = 0 : i64, scratch_operands = 2 : i64, tpu.core_type = #tpu.core_type<tc>, window_params = [{transform_indices = @transform_0, window_bounds = array<i64: 16, 32>}, {transform_indices = @transform_1, window_bounds = array<i64: 128, 32>}, {transform_indices = @transform_2, window_bounds = array<i64: 1, 128>}, {transform_indices = @transform_3, window_bounds = array<i64: 16, 1>}]} {
    %c0_i32 = arith.constant 0 : i32
    %0 = arith.cmpi eq, %arg1, %c0_i32 : i32
    %1 = arith.extui %0 : i1 to i32
    %c0_i32_0 = arith.constant 0 : i32
    %2 = arith.cmpi ne, %1, %c0_i32_0 : i32
    scf.if %2 {
      %cst_18 = arith.constant 0xFF800000 : f32
      %28 = vector.broadcast %cst_18 : f32 to vector<16x1xf32>
      %c0_19 = arith.constant 0 : index
      %c0_20 = arith.constant 0 : index
      %29 = vector.load %arg6[%c0_19, %c0_20] : memref<16x1xf32, #tpu.memory_space<vmem>>, vector<16x1xf32>
      tpu.vector_store %arg6[%c0_19, %c0_20], %28 {strides = array<i32>} : memref<16x1xf32, #tpu.memory_space<vmem>>, vector<16x1xf32>,
      %cst_21 = arith.constant 0.000000e+00 : f32
      %30 = vector.broadcast %cst_21 : f32 to vector<16x1xf32>
      %c0_22 = arith.constant 0 : index
      %c0_23 = arith.constant 0 : index
      %31 = vector.load %arg7[%c0_22, %c0_23] : memref<16x1xf32, #tpu.memory_space<vmem>>, vector<16x1xf32>
      tpu.vector_store %arg7[%c0_22, %c0_23], %30 {strides = array<i32>} : memref<16x1xf32, #tpu.memory_space<vmem>>, vector<16x1xf32>,
    } else {
    }
    %c0 = arith.constant 0 : index
    %c0_1 = arith.constant 0 : index
    %3 = vector.load %arg2[%c0, %c0_1] : memref<16x32xbf16, #tpu.memory_space<vmem>>, vector<16x32xbf16>
    %c0_2 = arith.constant 0 : index
    %c0_3 = arith.constant 0 : index
    %4 = vector.load %arg3[%c0_2, %c0_3] : memref<128x32xbf16, #tpu.memory_space<vmem>>, vector<128x32xbf16>
    %cst = arith.constant dense<0.000000e+00> : vector<16x128xf32>
    %5 = tpu.matmul %3, %4, %cst {dimension_numbers = #tpu.dot_dimension_numbers<[1], [1], [0], [0], [0, 0, 1, 0], [], []>} : vector<16x32xbf16>, vector<128x32xbf16>, vector<16x128xf32> -> vector<16x128xf32>
    %c0_4 = arith.constant 0 : index
    %c0_5 = arith.constant 0 : index
    %6 = vector.load %arg4[%c0_4, %c0_5] : memref<1x128xf32, #tpu.memory_space<vmem>>, vector<1x128xf32>
    %7 = vector.broadcast %6 : vector<1x128xf32> to vector<16x128xf32>
    %8 = arith.addf %5, %7 : vector<16x128xf32>
    %c0_6 = arith.constant 0 : index
    %c0_7 = arith.constant 0 : index
    %9 = vector.load %arg6[%c0_6, %c0_7] : memref<16x1xf32, #tpu.memory_space<vmem>>, vector<16x1xf32>
    %cst_8 = arith.constant dense<0xFF800000> : vector<16xf32>
    %10 = vector.multi_reduction <maximumf>, %8, %cst_8 [1] : vector<16x128xf32> to vector<16xf32>
    %11 = vector.shape_cast %10 : vector<16xf32> to vector<16x1xf32>
    %12 = arith.maximumf %9, %11 : vector<16x1xf32>
    %c0_9 = arith.constant 0 : index
    %c0_10 = arith.constant 0 : index
    %13 = vector.load %arg7[%c0_9, %c0_10] : memref<16x1xf32, #tpu.memory_space<vmem>>, vector<16x1xf32>
    %14 = arith.subf %9, %12 : vector<16x1xf32>
    %15 = math.exp %14 : vector<16x1xf32>
    %16 = arith.mulf %13, %15 : vector<16x1xf32>
    %17 = vector.broadcast %12 : vector<16x1xf32> to vector<16x128xf32>
    %18 = arith.subf %8, %17 : vector<16x128xf32>
    %19 = math.exp %18 : vector<16x128xf32>
    %cst_11 = arith.constant dense<0.000000e+00> : vector<16xf32>
    %20 = vector.multi_reduction <add>, %19, %cst_11 [1] : vector<16x128xf32> to vector<16xf32>
    %21 = vector.shape_cast %20 : vector<16xf32> to vector<16x1xf32>
    %22 = arith.addf %16, %21 : vector<16x1xf32>
    %c0_12 = arith.constant 0 : index
    %c0_13 = arith.constant 0 : index
    %23 = vector.load %arg7[%c0_12, %c0_13] : memref<16x1xf32, #tpu.memory_space<vmem>>, vector<16x1xf32>
    tpu.vector_store %arg7[%c0_12, %c0_13], %22 {strides = array<i32>} : memref<16x1xf32, #tpu.memory_space<vmem>>, vector<16x1xf32>,
    %c0_14 = arith.constant 0 : index
    %c0_15 = arith.constant 0 : index
    %24 = vector.load %arg6[%c0_14, %c0_15] : memref<16x1xf32, #tpu.memory_space<vmem>>, vector<16x1xf32>
    tpu.vector_store %arg6[%c0_14, %c0_15], %12 {strides = array<i32>} : memref<16x1xf32, #tpu.memory_space<vmem>>, vector<16x1xf32>,
    %c0_i32_16 = arith.constant 0 : i32
    %25 = arith.cmpi eq, %arg1, %c0_i32_16 : i32
    %26 = arith.extui %25 : i1 to i32
    %c0_i32_17 = arith.constant 0 : i32
    %27 = arith.cmpi ne, %26, %c0_i32_17 : i32
    scf.if %27 {
      %c0_18 = arith.constant 0 : index
      %c0_19 = arith.constant 0 : index
      %28 = vector.load %arg6[%c0_18, %c0_19] : memref<16x1xf32, #tpu.memory_space<vmem>>, vector<16x1xf32>
      %c0_20 = arith.constant 0 : index
      %c0_21 = arith.constant 0 : index
      %29 = vector.load %arg7[%c0_20, %c0_21] : memref<16x1xf32, #tpu.memory_space<vmem>>, vector<16x1xf32>
      %30 = math.log %29 : vector<16x1xf32>
      %31 = arith.addf %28, %30 : vector<16x1xf32>
      %c0_22 = arith.constant 0 : index
      %c0_23 = arith.constant 0 : index
      %32 = vector.load %arg5[%c0_22, %c0_23] : memref<16x1xf32, #tpu.memory_space<vmem>>, vector<16x1xf32>
      tpu.vector_store %arg5[%c0_22, %c0_23], %31 {strides = array<i32>} : memref<16x1xf32, #tpu.memory_space<vmem>>, vector<16x1xf32>,
    } else {
    }
    return
  }
  func.func @transform_0(%arg0: i32, %arg1: i32) -> (i32, i32) {
    %c0_i32 = arith.constant 0 : i32
    %c0_i32_0 = arith.constant 0 : i32
    return %arg0, %c0_i32 : i32, i32
  }
  func.func @transform_1(%arg0: i32, %arg1: i32) -> (i32, i32) {
    %c0_i32 = arith.constant 0 : i32
    %c0_i32_0 = arith.constant 0 : i32
    return %arg1, %c0_i32 : i32, i32
  }
  func.func @transform_2(%arg0: i32, %arg1: i32) -> (i32, i32) {
    %c0_i32 = arith.constant 0 : i32
    %c0_i32_0 = arith.constant 0 : i32
    return %c0_i32, %arg1 : i32, i32
  }
  func.func @transform_3(%arg0: i32, %arg1: i32) -> (i32, i32) {
    %c0_i32 = arith.constant 0 : i32
    %c0_i32_0 = arith.constant 0 : i32
    return %arg0, %c0_i32 : i32, i32
  }
}

module attributes {stable_mosaic.version = 11 : i64} {
  func.func @_proj_out_kernel(%arg0: i32, %arg1: i32, %arg2: memref<16x32xbf16, #tpu.memory_space<vmem>>, %arg3: memref<128x32xbf16, #tpu.memory_space<vmem>>, %arg4: memref<1x128xf32, #tpu.memory_space<vmem>>, %arg5: memref<16x1xf32, #tpu.memory_space<vmem>>, %arg6: memref<16x128xf32, #tpu.memory_space<vmem>>) attributes {dimension_semantics = [#tpu.dimension_semantics<parallel>, #tpu.dimension_semantics<parallel>], iteration_bounds = array<i64: 1, 1>, scalar_prefetch = 0 : i64, scratch_operands = 0 : i64, tpu.core_type = #tpu.core_type<tc>, window_params = [{transform_indices = @transform_0, window_bounds = array<i64: 16, 32>}, {transform_indices = @transform_1, window_bounds = array<i64: 128, 32>}, {transform_indices = @transform_2, window_bounds = array<i64: 1, 128>}, {transform_indices = @transform_3, window_bounds = array<i64: 16, 1>}, {transform_indices = @transform_4, window_bounds = array<i64: 16, 128>}]} {
    %c0 = arith.constant 0 : index
    %c0_0 = arith.constant 0 : index
    %0 = vector.load %arg2[%c0, %c0_0] : memref<16x32xbf16, #tpu.memory_space<vmem>>, vector<16x32xbf16>
    %c0_1 = arith.constant 0 : index
    %c0_2 = arith.constant 0 : index
    %1 = vector.load %arg3[%c0_1, %c0_2] : memref<128x32xbf16, #tpu.memory_space<vmem>>, vector<128x32xbf16>
    %cst = arith.constant dense<0.000000e+00> : vector<16x128xf32>
    %2 = tpu.matmul %0, %1, %cst {dimension_numbers = #tpu.dot_dimension_numbers<[1], [1], [0], [0], [0, 0, 1, 0], [], []>} : vector<16x32xbf16>, vector<128x32xbf16>, vector<16x128xf32> -> vector<16x128xf32>
    %c0_3 = arith.constant 0 : index
    %c0_4 = arith.constant 0 : index
    %3 = vector.load %arg4[%c0_3, %c0_4] : memref<1x128xf32, #tpu.memory_space<vmem>>, vector<1x128xf32>
    %4 = vector.broadcast %3 : vector<1x128xf32> to vector<16x128xf32>
    %5 = arith.addf %2, %4 : vector<16x128xf32>
    %c0_5 = arith.constant 0 : index
    %c0_6 = arith.constant 0 : index
    %6 = vector.load %arg5[%c0_5, %c0_6] : memref<16x1xf32, #tpu.memory_space<vmem>>, vector<16x1xf32>
    %7 = vector.broadcast %6 : vector<16x1xf32> to vector<16x128xf32>
    %8 = arith.subf %5, %7 : vector<16x128xf32>
    %c0_7 = arith.constant 0 : index
    %c0_8 = arith.constant 0 : index
    %9 = vector.load %arg6[%c0_7, %c0_8] : memref<16x128xf32, #tpu.memory_space<vmem>>, vector<16x128xf32>
    tpu.vector_store %arg6[%c0_7, %c0_8], %8 {strides = array<i32>} : memref<16x128xf32, #tpu.memory_space<vmem>>, vector<16x128xf32>,
    return
  }
  func.func @transform_0(%arg0: i32, %arg1: i32) -> (i32, i32) {
    %c0_i32 = arith.constant 0 : i32
    %c0_i32_0 = arith.constant 0 : i32
    return %arg0, %c0_i32 : i32, i32
  }
  func.func @transform_1(%arg0: i32, %arg1: i32) -> (i32, i32) {
    %c0_i32 = arith.constant 0 : i32
    %c0_i32_0 = arith.constant 0 : i32
    return %arg1, %c0_i32 : i32, i32
  }
  func.func @transform_2(%arg0: i32, %arg1: i32) -> (i32, i32) {
    %c0_i32 = arith.constant 0 : i32
    %c0_i32_0 = arith.constant 0 : i32
    return %c0_i32, %arg1 : i32, i32
  }
  func.func @transform_3(%arg0: i32, %arg1: i32) -> (i32, i32) {
    %c0_i32 = arith.constant 0 : i32
    %c0_i32_0 = arith.constant 0 : i32
    return %arg0, %c0_i32 : i32, i32
  }
  func.func @transform_4(%arg0: i32, %arg1: i32) -> (i32, i32) {
    %c0_i32 = arith.constant 0 : i32
    return %arg0, %arg1 : i32, i32
  }
}

</mosaic_0001>

<bundles_post_ra>
// kernel: bert_finetune_forward.14
= control target key start
LH: loop header
LB: loop body
LE: loop exit
PB: predicated region body
PF: predicated region fallthrough
CT: control target
= control target key end

     0   :  { %vm19_vm0 = vcmask 785408   ;;  %v151_v0 = vmov 0.0   ;;  %vm152_vm1 = vmmov 0   ;;  %vm47_vm2 = vcmask 261120   ;;  %s195_s1 = inlined_call_operand.vmem [shape: bf16[32,96], index: 1, kind: input, shape index: {}]   ;;  %s196_s0 = inlined_call_operand.vmem [shape: bf16[16,32], index: 0, kind: input, shape index: {}]   ;;  %s197_s2 = inlined_call_operand.vmem [shape: f32[1,96], index: 2, kind: input, shape index: {}]   ;;  %s198_s3 = inlined_call_operand.vmem [shape: bf16[16,96], index: 3, kind: output, shape index: {}]  }
   0x1   :  { %138 = vmatprep.subr.bf16.mxu0 %v151_v0  ;;  %v148_v1 = vld [vmem:[%s195_s1] sm:$0xff]   ;;  %142 = vmatprep.mubr.msk.bf16.mxu0 %vm152_vm1, %v151_v0  ;;  %20 = vst.msk [vmem:[#allocation2] sm:$0xff] %vm19_vm0, %v151_v0  ;;  %21 = vst.msk [vmem:[#allocation2 + $0x8] sm:$0xff] %vm19_vm0, %v151_v0  ;;  %v149_v2 = vld [vmem:[%s195_s1 + $0x8] sm:$0xff]   ;;  %vm119_vm3 = vcmask 781312  }
   0x2   :  { %139 = vmatpush3.bf16.msra.mxu0 %v148_v1  ;;  %v150_v3 = vld [vmem:[%s196_s0] sm:$0xff]  }
   0x3   :  { %140 = vmatprep.subr.bf16.mxu0 %v151_v0  ;;  %v130_v12 = vld [vmem:[%s197_s2] ss:$0 sm:$0xff] }
   0x6   :  { %141 = vmatpush3.bf16.msra.mxu0 %v149_v2 }
   0x8   :  { %v22_v4 = vld [vmem:[#allocation2] sm:$0xff]  ;;  %v23_v6 = vld [vmem:[#allocation2 + $0x8] sm:$0xff] }
   0x9   :  { %143 = vmatmul.mubr.msk.bf16.vlgmr.msra.gmra.mrb[0].mxu0 %vm47_vm2, %v150_v3 }
  0xdc   :  { %v85_v5 = vpop.f32.mrb[0].mxu0 }
  0xdd   :  { %v92_v7 = vadd.f32 %v85_v5, %v22_v4  ;;  %v144_v8 = vpop.f32.mrb[1].mxu0 }
  0xde   :  { %v88_v9 = vpop.f32.mrb[2].mxu0 }
  0xdf   :  { %95 = vst.msk [vmem:[#allocation2] sm:$0xff] %vm19_vm0, %v92_v7  ;;  %v93_v10 = vadd.f32 %v88_v9, %v23_v6  ;;  %v145_v11 = vpop.f32.mrb[3].mxu0 }
  0xe1   :  { %96 = vst.msk [vmem:[#allocation2 + $0x8] sm:$0xff] %vm19_vm0, %v93_v10 }
  0xe6   :  { %v100_v13 = vld [vmem:[#allocation2] sm:$0xff] }
  0xe7   :  { %v109_v14 = vadd.f32 %v130_v12, %v100_v13 }
  0xe8   :  { %v101_v15 = vld [vmem:[#allocation2 + $0x8] sm:$0xff] }
  0xe9   :  { %v133_v16 = vpack.c.bf16 %v109_v14, %v109_v14  ;;  %v110_v17 = vadd.f32 %v130_v12, %v101_v15 }
  0xeb   :  { %120 = vst.msk [vmem:[%s198_s3] sm:$0xf] %vm119_vm3, %v133_v16  ;;  %v134_v18 = vpack.c.bf16 %v110_v17, %v110_v17 }
  0xed   :  { %121 = vst.msk [vmem:[%s198_s3 + $0x4] sm:$0xf] %vm119_vm3, %v134_v18 }

// kernel: bert_finetune_forward.13
= control target key start
LH: loop header
LB: loop body
LE: loop exit
PB: predicated region body
PF: predicated region fallthrough
CT: control target
= control target key end

     0   :  { %vm16_vm0 = vcmask 261120   ;;  %vm70_vm1 = vcmask 257024   ;;  %s129_s0 = inlined_call_operand.vmem [shape: f32[16,32], index: 0, kind: input, shape index: {}]   ;;  %s130_s1 = inlined_call_operand.vmem [shape: f32[1,32], index: 1, kind: input, shape index: {}]   ;;  %s131_s2 = inlined_call_operand.vmem [shape: f32[1,32], index: 2, kind: input, shape index: {}]   ;;  %s132_s3 = inlined_call_operand.vmem [shape: bf16[16,32], index: 3, kind: output, shape index: {}]  }
   0x1   :  { %v14_v0 = vld [vmem:[%s129_s0] sm:$0xff]  ;;  %v15_v1 = vld [vmem:[%s129_s0 + $0x8] sm:$0xff] }
   0x2   :  { %v17_v2 = vsel %vm16_vm0, %v14_v0, 0.0  ;;  %v20_v3 = vsel %vm16_vm0, %v15_v1, 0.0  ;;  %v77_v21 = vld [vmem:[%s130_s1] ss:$0 sm:$0xff] }
   0x3   :  { %18 = vadd.xlane.f32.xlu0 %v17_v2  ;;  %v78_v23 = vld [vmem:[%s131_s2] ss:$0 sm:$0xff] }
   0x7   :  { %21 = vadd.xlane.f32.xlu0 %v20_v3 }
  0x90   :  { %v19_v4 = vpop.xlane.xlu0 %18 }
  0x91   :  { %v24_v5 = vmul.f32 0.03125, %v19_v4 }
  0x93   :  { %v26_v6 = vsub.f32 %v14_v0, %v24_v5 }
  0x94   :  { %v22_v7 = vpop.xlane.xlu0 %21 }
  0x95   :  { %v25_v8 = vmul.f32 0.03125, %v22_v7  ;;  %v28_v9 = vmul.f32 %v26_v6, %v26_v6 }
  0x97   :  { %v27_v10 = vsub.f32 %v15_v1, %v25_v8  ;;  %v30_v11 = vsel %vm16_vm0, %v28_v9, 0.0 }
  0x98   :  { %31 = vadd.xlane.f32.xlu1 %v30_v11 }
  0x99   :  { %v29_v12 = vmul.f32 %v27_v10, %v27_v10 }
  0x9b   :  { %v33_v13 = vsel %vm16_vm0, %v29_v12, 0.0 }
  0x9c   :  { %34 = vadd.xlane.f32.xlu1 %v33_v13 }
 0x125   :  { %v32_v14 = vpop.xlane.xlu1 %31 }
 0x126   :  { %v36_v15 = vmul.f32 0.03125, %v32_v14 }
 0x128   :  { %v38_v16 = vadd.f32 1e-12, %v36_v15 }
 0x129   :  { %v35_v17 = vpop.xlane.xlu1 %34 }
 0x12a   :  { %83 = vrsqrt.f32 %v38_v16  ;;  %v37_v18 = vmul.f32 0.03125, %v35_v17 }
 0x12c   :  { %v39_v19 = vadd.f32 1e-12, %v37_v18 }
 0x12e   :  { %85 = vrsqrt.f32 %v39_v19 }
 0x134   :  { %v84_v20 = vpop.eup %83 }
 0x135   :  { %v42_v22 = vmul.f32 %v84_v20, %v26_v6 }
 0x137   :  { %v51_v24 = vmul.f32 %v77_v21, %v42_v22 }
 0x138   :  { %v86_v25 = vpop.eup %85 }
 0x139   :  { %v60_v26 = vadd.f32 %v78_v23, %v51_v24  ;;  %v43_v27 = vmul.f32 %v86_v25, %v27_v10 }
 0x13b   :  { %v81_v28 = vpack.c.bf16 %v60_v26, %v60_v26  ;;  %v52_v29 = vmul.f32 %v77_v21, %v43_v27 }
 0x13d   :  { %71 = vst.msk [vmem:[%s132_s3] sm:$0xf] %vm70_vm1, %v81_v28  ;;  %v61_v30 = vadd.f32 %v78_v23, %v52_v29 }
 0x13f   :  { %v82_v31 = vpack.c.bf16 %v61_v30, %v61_v30 }
 0x141   :  { %72 = vst.msk [vmem:[%s132_s3 + $0x4] sm:$0xf] %vm70_vm1, %v82_v31 }

// kernel: bert_finetune_forward.15
= control target key start
LH: loop header
LB: loop body
LE: loop exit
PB: predicated region body
PF: predicated region fallthrough
CT: control target
= control target key end

     0   :  { %s563_s9 = smov 0   ;;  %s615_s0 = inlined_call_operand.vmem [shape: bf16[2,8,96], index: 0, kind: input, shape index: {}]   ;;  %s616_s1 = inlined_call_operand.vmem [shape: f32[2,1,8], index: 1, kind: input, shape index: {}]   ;;  %s617_s2 = inlined_call_operand.vmem [shape: bf16[2,8,32], index: 2, kind: output, shape index: {}]  }
   0x1 LB: > { %s460_s10 = sadd.s32 4294967295, %s538_s9   ;;  %p464_p0 = scmp.ge.s32.totalorder %s538_s9, 1  ;;  %s538_s9 = sphi %s563_s9, %s12_s9  }
   0x2   : > { %p119_p1 = scmp.lt.s32.totalorder %s538_s9, 3 }
   0x4   : > { %p120_p2 = pnand %p464_p0, %p119_p1 }
   0x5   : > { %p142_p3 = scmp.lt.s32.totalorder (!%p120_p2), %s460_s10, 1  ;;  %v540_v0 = vmov (!%p120_p2), 0.0   ;;  %vm541_vm0 = vmmov (!%p120_p2), 0   ;;  %s542_s15 = smov (!%p120_p2), 96   ;;  %vm161_vm1 = vcmask (!%p120_p2), 130048   ;;  %vm216_vm2 = vcmask (!%p120_p2), 64512  }
   0x6   : > { %123 = sbr.rel (%p120_p2) target bundleno = 1545 (0x609), region = 28  ;;  %483 = vmatprep.subr.bf16.mxu0 (!%p120_p2), %v540_v0  ;;  %485 = vmatprep.mubr.msk.bf16.mxu0 (!%p120_p2), %vm541_vm0, %v540_v0  ;;  %s543_s16 = smov (!%p120_p2), 64   ;;  %vm234_vm3 = vcmask (!%p120_p2), 1043456   ;;  %vm396_vm4 = vcmask (!%p120_p2), 257024  }
   0x7   : > { %489 = vmatprep.subr.bf16.mxu1 (!%p120_p2), %v540_v0  ;;  %491 = vmatprep.mubr.msk.bf16.mxu1 (!%p120_p2), %vm541_vm0, %v540_v0  ;;  %s544_s20 = smov (!%p120_p2), 80   ;;  %s545_s21 = smov (!%p120_p2), 112  }
   0x8   : > { %s546_s22 = smov (!%p120_p2), 48   ;;  %s547_s23 = smov (!%p120_p2), 16  }
   0xd   : > { %s619_s10 = smov (!%p142_p3, %s460_s10), 1 }
   0xe   : > { %s465_s11 = sshll.u32 %s619_s10, 2  ;;  %s148_s19 = scalar_lea.vmem %s616_s1, %s619_s10 }
   0xf   : > { %s145_s14 = scalar_lea.vmem %s615_s0, %s465_s11  ;;  %v469_v6 = vld [vmem:[%s148_s19] ss:$0 sm:$0xff]  ;;  %s152_s26 = scalar_lea.vmem %s617_s2, %s465_s11 }
  0x10   : > { %v155_v1 = vld [vmem:[%s145_s14] sm:$0xf] }
  0x11   : > { %v581_v2 = vcombine.low %v155_v1, %v155_v1 }
  0x13   : > { %159 = vrot.lane.b32.xlu0 %v581_v2, %s542_s15  ;;  %229 = vrot.lane.b32.xlu1 %v581_v2, %s543_s16 }
  0x85   : > { %v160_v3 = vpop.permute.xlu0 %159  ;;  %v230_v13 = vpop.permute.xlu1 %229 }
  0x86   : > { %v166_v4 = vsel %vm161_vm1, %v160_v3, 0  ;;  %v236_v14 = vsel %vm234_vm3, %v230_v13, 0 }
  0x87   : > { %484 = vmatpush3.bf16.xpose.msra.mxu0 %v166_v4  ;;  %490 = vmatpush3.bf16.msra.mxu1 %v236_v14 }
  0x88   : > { %501 = vmatprep.subr.bf16.mxu0 %v540_v0  ;;  %495 = vmatprep.subr.bf16.mxu1 %v540_v0 }
  0x8e   : > { %486 = vmatmul.mubr.msk.bf16.vlgmr.msra.gmra.mrb[0].mxu0 %vm161_vm1, %v155_v1 }
  0x8f   : > { %503 = vmatprep.mubr.msk.bf16.mxu0 %vm541_vm0, %v540_v0 }
 0x161   : > { %v202_v5 = vpop.f32.mrb[0].mxu0 }
 0x162   : > { %v208_v7 = vmul.f32 0.25, %v202_v5  ;;  %v487_v8 = vpop.f32.mrb[1].mxu0 }
 0x163   : > { %v205_v9 = vpop.f32.mrb[2].mxu0 }
 0x164   : > { %v488_v10 = vpop.f32.mrb[3].mxu0  ;;  %v215_v11 = vadd.f32 %v469_v6, %v208_v7 }
 0x166   : > { %v217_v12 = vsel %vm216_vm2, %v215_v11, -inf }
 0x167   : > { %218 = vmax.xlane.f32.xlu0 %v217_v12 }
 0x1f4   : > { %v219_v15 = vpop.xlane.xlu0 %218 }
 0x1f5   : > { %v220_v16 = vsub.f32 %v215_v11, %v219_v15 }
 0x1f7   : > { %v221_v17 = vmul.f32 1.442695, %v220_v16 }
 0x1f9   : > { %524 = vpow2.f32 %v221_v17 }
 0x203   : > { %v525_v18 = vpop.eup %524 }
 0x204   : > { %v223_v19 = vsel %vm216_vm2, %v525_v18, 0.0 }
 0x205   : > { %224 = vadd.xlane.f32.xlu1 %v223_v19 }
 0x216   : > { %280 = vrot.lane.b32.xlu1 %v581_v2, %s544_s20 }
 0x21a   : > { %278 = vrot.lane.b32.xlu1 %v581_v2, %s545_s21 }
 0x292   : > { %v225_v20 = vpop.xlane.xlu1 %224 }
 0x293   : > { %526 = vrcp.f32 %v225_v20 }
 0x296   : > { %v281_v22 = vpop.permute.xlu1 %280 }
 0x297   : > { %v286_v24 = vsel %vm161_vm1, %v281_v22, 0 }
 0x29a   : > { %v279_v26 = vpop.permute.xlu1 %278 }
 0x29d   : > { %v527_v21 = vpop.eup %526 }
 0x29e   : > { %v227_v23 = vmul.f32 %v527_v21, %v525_v18 }
 0x2a0   : > { %v228_v25 = vpack.c.bf16 %v227_v23, %v227_v23 }
 0x2a2   : > { %492 = vmatmul.mubr.msk.bf16.vlgmr.msra.gmra.mrb[0].mxu1 %vm216_vm2, %v228_v25 }
 0x2a3   : > { %496 = vmatpush3.bf16.xpose.msra.mxu1 %v286_v24  ;;  %497 = vmatprep.mubr.msk.bf16.mxu1 %vm541_vm0, %v540_v0 }
 0x2aa   : > { %498 = vmatmul.mubr.msk.bf16.vlgmr.msra.gmra.mrb[4].mxu1 %vm161_vm1, %v279_v26 }
 0x375   : > { %v272_v27 = vpop.f32.mrb[0].mxu1 }
 0x376   : > { %v493_v28 = vpop.f32.mrb[1].mxu1 }
 0x377   : > { %v275_v29 = vpop.f32.mrb[2].mxu1 }
 0x378   : > { %v494_v30 = vpop.f32.mrb[3].mxu1 }
 0x37d   : > { %v322_v31 = vpop.f32.mrb[4].mxu1 }
 0x37e   : > { %v328_v32 = vmul.f32 0.25, %v322_v31  ;;  %v499_v33 = vpop.f32.mrb[5].mxu1 }
 0x37f   : > { %v325_v34 = vpop.f32.mrb[6].mxu1 }
 0x380   : > { %v500_v35 = vpop.f32.mrb[7].mxu1  ;;  %v329_v36 = vadd.f32 %v469_v6, %v328_v32 }
 0x382   : > { %v330_v37 = vsel %vm216_vm2, %v329_v36, -inf }
 0x383   : > { %331 = vmax.xlane.f32.xlu1 %v330_v37 }
 0x410   : > { %v332_v38 = vpop.xlane.xlu1 %331 }
 0x411   : > { %v333_v39 = vsub.f32 %v329_v36, %v332_v38 }
 0x413   : > { %v334_v40 = vmul.f32 1.442695, %v333_v39 }
 0x415   : > { %528 = vpow2.f32 %v334_v40 }
 0x41f   : > { %v529_v41 = vpop.eup %528 }
 0x420   : > { %v336_v42 = vsel %vm216_vm2, %v529_v41, 0.0 }
 0x421   : > { %337 = vadd.xlane.f32.xlu0 %v336_v42 }
 0x437   : > { %342 = vrot.lane.b32.xlu0 %v581_v2, %s546_s22 }
 0x4ae   : > { %v338_v43 = vpop.xlane.xlu0 %337 }
 0x4af   : > { %530 = vrcp.f32 %v338_v43 }
 0x4b2   : > { %v343_v44 = vpop.permute.xlu0 %342 }
 0x4b3   : > { %v348_v45 = vsel %vm234_vm3, %v343_v44, 0 }
 0x4b4   : > { %502 = vmatpush3.bf16.msra.mxu0 %v348_v45 }
 0x4b9   : > { %v531_v46 = vpop.eup %530 }
 0x4ba   : > { %v340_v47 = vmul.f32 %v531_v46, %v529_v41 }
 0x4bc   : > { %v341_v48 = vpack.c.bf16 %v340_v47, %v340_v47 }
 0x4be   : > { %504 = vmatmul.mubr.msk.bf16.vlgmr.msra.gmra.mrb[4].mxu0 %vm216_vm2, %v341_v48 }
 0x591   : > { %v384_v49 = vpop.f32.mrb[4].mxu0 }
 0x592   : > { %391 = vrot.lane.b32.xlu0 %v384_v49, %s547_s23  ;;  %v505_v50 = vpop.f32.mrb[5].mxu0 }
 0x593   : > { %v387_v51 = vpop.f32.mrb[6].mxu0 }
 0x594   : > { %v506_v52 = vpop.f32.mrb[7].mxu0 }
 0x604   : > { %v392_v53 = vpop.permute.xlu0 %391 }
 0x605   : > { %v394_v54 = vsel %vm161_vm1, %v272_v27, %v392_v53 }
 0x606   : > { %v395_v55 = vpack.c.bf16 %v394_v54, %v394_v54 }
 0x608   : > { %397 = vst.msk [vmem:[%s152_s26] sm:$0xf] %vm396_vm4, %v395_v55 }
 0x609 PF: > { %s12_s9 = sadd.s32 1, %s538_s9  }
 0x60a   : > { %p9_p4 = scmp.ge.s32.totalorder %s12_s9, 4  }
 0x60c   :  { %11 = sbr.rel (!%p9_p4) target bundleno = 1 (0x1), region = 61 }

// kernel: bert_finetune_forward.16
= control target key start
LH: loop header
LB: loop body
LE: loop exit
PB: predicated region body
PF: predicated region fallthrough
CT: control target
= control target key end

     0   :  { %vm28_vm0 = vcmask 261120   ;;  %v220_v0 = vmov 0.0   ;;  %vm221_vm1 = vmmov 0   ;;  %vm178_vm2 = vcmask 257024   ;;  %s293_s1 = inlined_call_operand.vmem [shape: bf16[32,32], index: 1, kind: input, shape index: {}]   ;;  %s294_s0 = inlined_call_operand.vmem [shape: bf16[16,32], index: 0, kind: input, shape index: {}]   ;;  %s295_s3 = inlined_call_operand.vmem [shape: bf16[16,32], index: 3, kind: input, shape index: {}]   ;;  %s296_s2 = inlined_call_operand.vmem [shape: f32[1,32], index: 2, kind: input, shape index: {}]   ;;  %s297_s4 = inlined_call_operand.vmem [shape: f32[1,32], index: 4, kind: input, shape index: {}]   ;;  %s298_s5 = inlined_call_operand.vmem [shape: f32[1,32], index: 5, kind: input, shape index: {}]   ;;  %s299_s6 = inlined_call_operand.vmem [shape: bf16[16,32], index: 6, kind: output, shape index: {}]  }
   0x1   :  { %203 = vmatprep.subr.bf16.mxu0 %v220_v0  ;;  %v213_v1 = vld [vmem:[%s293_s1] sm:$0xff]   ;;  %207 = vmatprep.mubr.msk.bf16.mxu0 %vm221_vm1, %v220_v0  ;;  %29 = vst.msk [vmem:[#allocation2] sm:$0xff] %vm28_vm0, %v220_v0  ;;  %30 = vst.msk [vmem:[#allocation2 + $0x8] sm:$0xff] %vm28_vm0, %v220_v0  ;;  %v214_v2 = vld [vmem:[%s293_s1 + $0x8] sm:$0xff]  }
   0x2   :  { %204 = vmatpush3.bf16.msra.mxu0 %v213_v1  ;;  %v215_v3 = vld [vmem:[%s294_s0] sm:$0xff]  }
   0x3   :  { %205 = vmatprep.subr.bf16.mxu0 %v220_v0  ;;  %v197_v12 = vld [vmem:[%s295_s3] sm:$0xff]  }
   0x4   :  { %v189_v13 = vld [vmem:[%s296_s2] ss:$0 sm:$0xff]  ;;  %v198_v14 = vunpack.c.l.bf16 %v197_v12  ;;  %v199_v17 = vunpack.c.h.bf16 %v197_v12 }
   0x5   :  { %v190_v41 = vld [vmem:[%s297_s4] ss:$0 sm:$0xff] }
   0x6   :  { %206 = vmatpush3.bf16.msra.mxu0 %v214_v2  ;;  %v191_v43 = vld [vmem:[%s298_s5] ss:$0 sm:$0xff] }
   0x8   :  { %v31_v4 = vld [vmem:[#allocation2] sm:$0xff]  ;;  %v32_v6 = vld [vmem:[#allocation2 + $0x8] sm:$0xff] }
   0x9   :  { %208 = vmatmul.mubr.msk.bf16.vlgmr.msra.gmra.mrb[0].mxu0 %vm28_vm0, %v215_v3 }
  0xdc   :  { %v94_v5 = vpop.f32.mrb[0].mxu0 }
  0xdd   :  { %v101_v7 = vadd.f32 %v94_v5, %v31_v4  ;;  %v209_v8 = vpop.f32.mrb[1].mxu0 }
  0xde   :  { %v97_v9 = vpop.f32.mrb[2].mxu0 }
  0xdf   :  { %103 = vst.msk [vmem:[#allocation2] sm:$0xff] %vm28_vm0, %v101_v7  ;;  %v102_v10 = vadd.f32 %v97_v9, %v32_v6  ;;  %v210_v11 = vpop.f32.mrb[3].mxu0 }
  0xe1   :  { %104 = vst.msk [vmem:[#allocation2 + $0x8] sm:$0xff] %vm28_vm0, %v102_v10 }
  0xe6   :  { %v108_v15 = vld [vmem:[#allocation2] sm:$0xff] }
  0xe7   :  { %v117_v16 = vadd.f32 %v189_v13, %v108_v15 }
  0xe8   :  { %v109_v18 = vld [vmem:[#allocation2 + $0x8] sm:$0xff] }
  0xe9   :  { %v123_v19 = vadd.f32 %v198_v14, %v117_v16  ;;  %v118_v20 = vadd.f32 %v189_v13, %v109_v18 }
  0xeb   :  { %v125_v21 = vsel %vm28_vm0, %v123_v19, 0.0  ;;  %v124_v22 = vadd.f32 %v199_v17, %v118_v20 }
  0xec   :  { %126 = vadd.xlane.f32.xlu0 %v125_v21 }
  0xed   :  { %v128_v23 = vsel %vm28_vm0, %v124_v22, 0.0 }
  0xf0   :  { %129 = vadd.xlane.f32.xlu0 %v128_v23 }
 0x179   :  { %v127_v24 = vpop.xlane.xlu0 %126 }
 0x17a   :  { %v132_v25 = vmul.f32 0.03125, %v127_v24 }
 0x17c   :  { %v134_v26 = vsub.f32 %v123_v19, %v132_v25 }
 0x17d   :  { %v130_v27 = vpop.xlane.xlu0 %129 }
 0x17e   :  { %v133_v28 = vmul.f32 0.03125, %v130_v27  ;;  %v136_v29 = vmul.f32 %v134_v26, %v134_v26 }
 0x180   :  { %v135_v30 = vsub.f32 %v124_v22, %v133_v28  ;;  %v138_v31 = vsel %vm28_vm0, %v136_v29, 0.0 }
 0x181   :  { %139 = vadd.xlane.f32.xlu1 %v138_v31 }
 0x182   :  { %v137_v32 = vmul.f32 %v135_v30, %v135_v30 }
 0x184   :  { %v141_v33 = vsel %vm28_vm0, %v137_v32, 0.0 }
 0x185   :  { %142 = vadd.xlane.f32.xlu1 %v141_v33 }
 0x20e   :  { %v140_v34 = vpop.xlane.xlu1 %139 }
 0x20f   :  { %v144_v35 = vmul.f32 0.03125, %v140_v34 }
 0x211   :  { %v146_v36 = vadd.f32 1e-12, %v144_v35 }
 0x212   :  { %v143_v37 = vpop.xlane.xlu1 %142 }
 0x213   :  { %216 = vrsqrt.f32 %v146_v36  ;;  %v145_v38 = vmul.f32 0.03125, %v143_v37 }
 0x215   :  { %v147_v39 = vadd.f32 1e-12, %v145_v38 }
 0x217   :  { %218 = vrsqrt.f32 %v147_v39 }
 0x21d   :  { %v217_v40 = vpop.eup %216 }
 0x21e   :  { %v150_v42 = vmul.f32 %v217_v40, %v134_v26 }
 0x220   :  { %v159_v44 = vmul.f32 %v190_v41, %v150_v42 }
 0x221   :  { %v219_v45 = vpop.eup %218 }
 0x222   :  { %v168_v46 = vadd.f32 %v191_v43, %v159_v44  ;;  %v151_v47 = vmul.f32 %v219_v45, %v135_v30 }
 0x224   :  { %v194_v48 = vpack.c.bf16 %v168_v46, %v168_v46  ;;  %v160_v49 = vmul.f32 %v190_v41, %v151_v47 }
 0x226   :  { %179 = vst.msk [vmem:[%s299_s6] sm:$0xf] %vm178_vm2, %v194_v48  ;;  %v169_v50 = vadd.f32 %v191_v43, %v160_v49 }
 0x228   :  { %v195_v51 = vpack.c.bf16 %v169_v50, %v169_v50 }
 0x22a   :  { %180 = vst.msk [vmem:[%s299_s6 + $0x4] sm:$0xf] %vm178_vm2, %v195_v51 }

// kernel: bert_finetune_forward.17
= control target key start
LH: loop header
LB: loop body
LE: loop exit
PB: predicated region body
PF: predicated region fallthrough
CT: control target
= control target key end

     0   :  { %vm19_vm0 = vcmask 523264   ;;  %v165_v0 = vmov 0.0   ;;  %vm166_vm1 = vmmov 0   ;;  %vm47_vm2 = vcmask 261120   ;;  %s209_s1 = inlined_call_operand.vmem [shape: bf16[32,64], index: 1, kind: input, shape index: {}]   ;;  %s210_s0 = inlined_call_operand.vmem [shape: bf16[16,32], index: 0, kind: input, shape index: {}]   ;;  %s211_s2 = inlined_call_operand.vmem [shape: f32[1,64], index: 2, kind: input, shape index: {}]   ;;  %s212_s3 = inlined_call_operand.vmem [shape: bf16[16,64], index: 3, kind: output, shape index: {}]  }
   0x1   :  { %148 = vmatprep.subr.bf16.mxu0 %v165_v0  ;;  %v158_v1 = vld [vmem:[%s209_s1] sm:$0xff]   ;;  %152 = vmatprep.mubr.msk.bf16.mxu0 %vm166_vm1, %v165_v0  ;;  %20 = vst.msk [vmem:[#allocation2] sm:$0xff] %vm19_vm0, %v165_v0  ;;  %21 = vst.msk [vmem:[#allocation2 + $0x8] sm:$0xff] %vm19_vm0, %v165_v0  ;;  %v159_v2 = vld [vmem:[%s209_s1 + $0x8] sm:$0xff]   ;;  %vm129_vm3 = vcmask 519168  }
   0x2   :  { %149 = vmatpush3.bf16.msra.mxu0 %v158_v1  ;;  %v160_v3 = vld [vmem:[%s210_s0] sm:$0xff]  }
   0x3   :  { %150 = vmatprep.subr.bf16.mxu0 %v165_v0  ;;  %v140_v12 = vld [vmem:[%s211_s2] ss:$0 sm:$0xff] }
   0x6   :  { %151 = vmatpush3.bf16.msra.mxu0 %v159_v2 }
   0x8   :  { %v22_v4 = vld [vmem:[#allocation2] sm:$0xff]  ;;  %v23_v6 = vld [vmem:[#allocation2 + $0x8] sm:$0xff] }
   0x9   :  { %153 = vmatmul.mubr.msk.bf16.vlgmr.msra.gmra.mrb[0].mxu0 %vm47_vm2, %v160_v3 }
  0xdc   :  { %v85_v5 = vpop.f32.mrb[0].mxu0 }
  0xdd   :  { %v92_v7 = vadd.f32 %v85_v5, %v22_v4  ;;  %v154_v8 = vpop.f32.mrb[1].mxu0 }
  0xde   :  { %v88_v9 = vpop.f32.mrb[2].mxu0 }
  0xdf   :  { %95 = vst.msk [vmem:[#allocation2] sm:$0xff] %vm19_vm0, %v92_v7  ;;  %v93_v10 = vadd.f32 %v88_v9, %v23_v6  ;;  %v155_v11 = vpop.f32.mrb[3].mxu0 }
  0xe1   :  { %96 = vst.msk [vmem:[#allocation2 + $0x8] sm:$0xff] %vm19_vm0, %v93_v10 }
  0xe6   :  { %v100_v13 = vld [vmem:[#allocation2] sm:$0xff] }
  0xe7   :  { %v109_v14 = vadd.f32 %v140_v12, %v100_v13 }
  0xe8   :  { %v101_v15 = vld [vmem:[#allocation2 + $0x8] sm:$0xff] }
  0xe9   :  { %v113_v16 = vmul.f32 0.70710677, %v109_v14  ;;  %v110_v17 = vadd.f32 %v140_v12, %v101_v15  ;;  %v111_v20 = vmul.f32 0.5, %v109_v14 }
  0xeb   :  { %161 = verf.f32 %v113_v16  ;;  %v114_v18 = vmul.f32 0.70710677, %v110_v17  ;;  %v112_v24 = vmul.f32 0.5, %v110_v17 }
  0xed   :  { %163 = verf.f32 %v114_v18 }
  0xf5   :  { %v162_v19 = vpop.eup %161 }
  0xf6   :  { %v117_v21 = vadd.f32 1.0, %v162_v19 }
  0xf7   :  { %v164_v22 = vpop.eup %163 }
  0xf8   :  { %v119_v23 = vmul.f32 %v117_v21, %v111_v20  ;;  %v118_v25 = vadd.f32 1.0, %v164_v22 }
  0xfa   :  { %v143_v26 = vpack.c.bf16 %v119_v23, %v119_v23  ;;  %v120_v27 = vmul.f32 %v118_v25, %v112_v24 }
  0xfc   :  { %130 = vst.msk [vmem:[%s212_s3] sm:$0xf] %vm129_vm3, %v143_v26  ;;  %v144_v28 = vpack.c.bf16 %v120_v27, %v120_v27 }
  0xfe   :  { %131 = vst.msk [vmem:[%s212_s3 + $0x4] sm:$0xf] %vm129_vm3, %v144_v28 }

// kernel: bert_finetune_forward.18
= control target key start
LH: loop header
LB: loop body
LE: loop exit
PB: predicated region body
PF: predicated region fallthrough
CT: control target
= control target key end

     0   :  { %vm28_vm0 = vcmask 261120   ;;  %v247_v0 = vmov 0.0   ;;  %vm248_vm1 = vmmov 0   ;;  %vm72_vm2 = vcmask 523264   ;;  %s325_s1 = inlined_call_operand.vmem [shape: bf16[64,32], index: 1, kind: input, shape index: {}]   ;;  %s326_s0 = inlined_call_operand.vmem [shape: bf16[16,64], index: 0, kind: input, shape index: {}]   ;;  %s327_s3 = inlined_call_operand.vmem [shape: bf16[16,32], index: 3, kind: input, shape index: {}]   ;;  %s328_s2 = inlined_call_operand.vmem [shape: f32[1,32], index: 2, kind: input, shape index: {}]   ;;  %s329_s4 = inlined_call_operand.vmem [shape: f32[1,32], index: 4, kind: input, shape index: {}]   ;;  %s330_s5 = inlined_call_operand.vmem [shape: f32[1,32], index: 5, kind: input, shape index: {}]   ;;  %s331_s6 = inlined_call_operand.vmem [shape: bf16[16,32], index: 6, kind: output, shape index: {}]  }
   0x1   :  { %224 = vmatprep.subr.bf16.mxu0 %v247_v0  ;;  %v238_v1 = vld [vmem:[%s325_s1] sm:$0xff]   ;;  %232 = vmatprep.mubr.msk.bf16.mxu0 %vm248_vm1, %v247_v0  ;;  %29 = vst.msk [vmem:[#allocation2] sm:$0xff] %vm28_vm0, %v247_v0  ;;  %30 = vst.msk [vmem:[#allocation2 + $0x8] sm:$0xff] %vm28_vm0, %v247_v0  ;;  %v239_v2 = vld [vmem:[%s325_s1 + $0x8] sm:$0xff]   ;;  %vm195_vm3 = vcmask 257024  }
   0x2   :  { %225 = vmatpush3.bf16.msra.mxu0 %v238_v1  ;;  %v240_v3 = vld [vmem:[%s325_s1 + $0x10] sm:$0xff]   ;;  %v241_v4 = vld [vmem:[%s325_s1 + $0x18] sm:$0xff]   ;;  %v242_v5 = vld [vmem:[%s326_s0] sm:$0xff]  }
   0x3   :  { %226 = vmatprep.subr.bf16.mxu0 %v247_v0  ;;  %v216_v14 = vld [vmem:[%s327_s3] sm:$0xff]  }
   0x4   :  { %v208_v15 = vld [vmem:[%s328_s2] ss:$0 sm:$0xff]  ;;  %v217_v16 = vunpack.c.l.bf16 %v216_v14  ;;  %v218_v19 = vunpack.c.h.bf16 %v216_v14 }
   0x5   :  { %v209_v43 = vld [vmem:[%s329_s4] ss:$0 sm:$0xff] }
   0x6   :  { %227 = vmatpush3.bf16.msra.mxu0 %v239_v2  ;;  %v210_v45 = vld [vmem:[%s330_s5] ss:$0 sm:$0xff] }
   0x7   :  { %228 = vmatprep.subr.bf16.mxu0 %v247_v0 }
   0x8   :  { %v31_v6 = vld [vmem:[#allocation2] sm:$0xff]  ;;  %v32_v8 = vld [vmem:[#allocation2 + $0x8] sm:$0xff] }
   0xa   :  { %229 = vmatpush3.bf16.msra.mxu0 %v240_v3 }
   0xb   :  { %230 = vmatprep.subr.bf16.mxu0 %v247_v0 }
   0xe   :  { %231 = vmatpush3.bf16.msra.mxu0 %v241_v4 }
  0x11   :  { %233 = vmatmul.mubr.msk.bf16.vlgmr.msra.gmra.mrb[0].mxu0 %vm72_vm2, %v242_v5 }
  0xe4   :  { %v110_v7 = vpop.f32.mrb[0].mxu0 }
  0xe5   :  { %v117_v9 = vadd.f32 %v110_v7, %v31_v6  ;;  %v234_v10 = vpop.f32.mrb[1].mxu0 }
  0xe6   :  { %v113_v11 = vpop.f32.mrb[2].mxu0 }
  0xe7   :  { %120 = vst.msk [vmem:[#allocation2] sm:$0xff] %vm28_vm0, %v117_v9  ;;  %v118_v12 = vadd.f32 %v113_v11, %v32_v8  ;;  %v235_v13 = vpop.f32.mrb[3].mxu0 }
  0xe9   :  { %121 = vst.msk [vmem:[#allocation2 + $0x8] sm:$0xff] %vm28_vm0, %v118_v12 }
  0xee   :  { %v125_v17 = vld [vmem:[#allocation2] sm:$0xff] }
  0xef   :  { %v134_v18 = vadd.f32 %v208_v15, %v125_v17 }
  0xf0   :  { %v126_v20 = vld [vmem:[#allocation2 + $0x8] sm:$0xff] }
  0xf1   :  { %v140_v21 = vadd.f32 %v217_v16, %v134_v18  ;;  %v135_v22 = vadd.f32 %v208_v15, %v126_v20 }
  0xf3   :  { %v142_v23 = vsel %vm28_vm0, %v140_v21, 0.0  ;;  %v141_v24 = vadd.f32 %v218_v19, %v135_v22 }
  0xf4   :  { %143 = vadd.xlane.f32.xlu0 %v142_v23 }
  0xf5   :  { %v145_v25 = vsel %vm28_vm0, %v141_v24, 0.0 }
  0xf8   :  { %146 = vadd.xlane.f32.xlu0 %v145_v25 }
 0x181   :  { %v144_v26 = vpop.xlane.xlu0 %143 }
 0x182   :  { %v149_v27 = vmul.f32 0.03125, %v144_v26 }
 0x184   :  { %v151_v28 = vsub.f32 %v140_v21, %v149_v27 }
 0x185   :  { %v147_v29 = vpop.xlane.xlu0 %146 }
 0x186   :  { %v150_v30 = vmul.f32 0.03125, %v147_v29  ;;  %v153_v31 = vmul.f32 %v151_v28, %v151_v28 }
 0x188   :  { %v152_v32 = vsub.f32 %v141_v24, %v150_v30  ;;  %v155_v33 = vsel %vm28_vm0, %v153_v31, 0.0 }
 0x189   :  { %156 = vadd.xlane.f32.xlu1 %v155_v33 }
 0x18a   :  { %v154_v34 = vmul.f32 %v152_v32, %v152_v32 }
 0x18c   :  { %v158_v35 = vsel %vm28_vm0, %v154_v34, 0.0 }
 0x18d   :  { %159 = vadd.xlane.f32.xlu1 %v158_v35 }
 0x216   :  { %v157_v36 = vpop.xlane.xlu1 %156 }
 0x217   :  { %v161_v37 = vmul.f32 0.03125, %v157_v36 }
 0x219   :  { %v163_v38 = vadd.f32 1e-12, %v161_v37 }
 0x21a   :  { %v160_v39 = vpop.xlane.xlu1 %159 }
 0x21b   :  { %243 = vrsqrt.f32 %v163_v38  ;;  %v162_v40 = vmul.f32 0.03125, %v160_v39 }
 0x21d   :  { %v164_v41 = vadd.f32 1e-12, %v162_v40 }
 0x21f   :  { %245 = vrsqrt.f32 %v164_v41 }
 0x225   :  { %v244_v42 = vpop.eup %243 }
 0x226   :  { %v167_v44 = vmul.f32 %v244_v42, %v151_v28 }
 0x228   :  { %v176_v46 = vmul.f32 %v209_v43, %v167_v44 }
 0x229   :  { %v246_v47 = vpop.eup %245 }
 0x22a   :  { %v185_v48 = vadd.f32 %v210_v45, %v176_v46  ;;  %v168_v49 = vmul.f32 %v246_v47, %v152_v32 }
 0x22c   :  { %v213_v50 = vpack.c.bf16 %v185_v48, %v185_v48  ;;  %v177_v51 = vmul.f32 %v209_v43, %v168_v49 }
 0x22e   :  { %196 = vst.msk [vmem:[%s331_s6] sm:$0xf] %vm195_vm3, %v213_v50  ;;  %v186_v52 = vadd.f32 %v210_v45, %v177_v51 }
 0x230   :  { %v214_v53 = vpack.c.bf16 %v186_v52, %v186_v52 }
 0x232   :  { %197 = vst.msk [vmem:[%s331_s6 + $0x4] sm:$0xf] %vm195_vm3, %v214_v53 }

// kernel: bert_finetune_forward.25
= control target key start
LH: loop header
LB: loop body
LE: loop exit
PB: predicated region body
PF: predicated region fallthrough
CT: control target
= control target key end

     0   :  { %v270_v1 = vmov 0.0   ;;  %vm89_vm0 = vcmask 261120   ;;  %vm271_vm1 = vmmov 0   ;;  %v272_v6 = vmov 0   ;;  %s358_s0 = inlined_call_operand.vmem [shape: bf16[16,32], index: 0, kind: input, shape index: {}]   ;;  %s359_s1 = inlined_call_operand.vmem [shape: bf16[128,32], index: 1, kind: input, shape index: {}]   ;;  %s360_s2 = inlined_call_operand.vmem [shape: f32[1,128], index: 2, kind: input, shape index: {}]   ;;  %s361_s3 = inlined_call_operand.vmem [shape: f32[16,1], index: 3, kind: input, shape index: {}]   ;;  %s362_s4 = inlined_call_operand.hbm [shape: f32[16,128], index: 4, kind: output, shape index: {}]  }
   0x1   :  { %v237_v0 = vld [vmem:[%s359_s1] sm:$0xff]   ;;  %210 = vmatprep.subr.bf16.mxu0 %v270_v1  ;;  %v238_v3 = vld [vmem:[%s359_s1 + $0x8] sm:$0xff]   ;;  %226 = vmatprep.mubr.msk.bf16.mxu0 %vm271_vm1, %v270_v1 }
   0x2   :  { %v94_v2 = vsel %vm89_vm0, %v237_v0, 0  ;;  %v97_v4 = vsel %vm89_vm0, %v238_v3, 0  ;;  %v158_v5 = vld [vmem:[%s361_s3] sm:$0xff]  ;;  %236 = vset.pattern.permute.xlu0 %v272_v6 }
   0x3   :  { %211 = vmatpush3.bf16.xpose.msra.mxu0 %v94_v2 }
   0x4   :  { %212 = vmatprep.subr.bf16.mxu0 %v270_v1 }
   0x5   :  { %9 = vsyncpa [#allocation3], 0  ;;  %162 = vperm.xlu0 %236, %v158_v5   ;;  %v239_v7 = vld [vmem:[%s359_s1 + $0x10] sm:$0xff]   ;;  %v159_v8 = vld [vmem:[%s361_s3 + $0x8] sm:$0xff]  ;;  %s273_s12 = smov [#allocation2]  }
   0x6   :  { %v100_v9 = vsel %vm89_vm0, %v239_v7, 0  ;;  %v240_v10 = vld [vmem:[%s359_s1 + $0x18] sm:$0xff]   ;;  %v241_v12 = vld [vmem:[%s359_s1 + $0x20] sm:$0xff]   ;;  %v242_v14 = vld [vmem:[%s359_s1 + $0x28] sm:$0xff]   ;;  %s179_s13 = sshll.u32 %s273_s12, 4  ;;  %s180_s13 = int_to_ptr.vmem [resolvable:$true] %s179_s13 }
   0x7   :  { %v103_v11 = vsel %vm89_vm0, %v240_v10, 0  ;;  %v106_v13 = vsel %vm89_vm0, %v241_v12, 0  ;;  %v109_v15 = vsel %vm89_vm0, %v242_v14, 0  ;;  %v243_v16 = vld [vmem:[%s359_s1 + $0x30] sm:$0xff]   ;;  %v244_v18 = vld [vmem:[%s359_s1 + $0x38] sm:$0xff]   ;;  %v245_v20 = vld [vmem:[%s358_s0] sm:$0xff]   ;;  %p251_p1 = scmp.lt.s32.totalorder %s180_s13, %s180_s13 }
   0x8   :  { %v112_v17 = vsel %vm89_vm0, %v243_v16, 0  ;;  %v115_v19 = vsel %vm89_vm0, %v244_v18, 0  ;;  %v190_v22 = vld [vmem:[%s360_s2] ss:$0 sm:$0xff]  ;;  %s246_s0 = scalar_lea.vmem %s180_s13, 256 }
   0x9   :  { %167 = vperm.xlu0 %236, %v159_v8   ;;  %p247_p0 = scmp.ne.s32.totalorder %s180_s13, %s246_s0  ;;  %p252_p2 = scmp.lt.s32.totalorder %s246_s0, %s246_s0 }
   0xb   :  { %213 = vmatpush3.bf16.xpose.msra.mxu0 %v97_v4  ;;  %p253_p3 = por %p252_p2, %p251_p1 }
   0xc   :  { %214 = vmatprep.subr.bf16.mxu0 %v270_v1 }
   0xd   :  { %p254_p4 = pnand %p253_p3, %p247_p0 }
  0x13   :  { %215 = vmatpush3.bf16.xpose.msra.mxu0 %v100_v9 }
  0x14   :  { %216 = vmatprep.subr.bf16.mxu0 %v270_v1 }
  0x1b   :  { %217 = vmatpush3.bf16.xpose.msra.mxu0 %v103_v11 }
  0x1c   :  { %218 = vmatprep.subr.bf16.mxu0 %v270_v1 }
  0x23   :  { %219 = vmatpush3.bf16.xpose.msra.mxu0 %v106_v13 }
  0x24   :  { %220 = vmatprep.subr.bf16.mxu0 %v270_v1 }
  0x2b   :  { %221 = vmatpush3.bf16.xpose.msra.mxu0 %v109_v15 }
  0x2c   :  { %222 = vmatprep.subr.bf16.mxu0 %v270_v1 }
  0x33   :  { %223 = vmatpush3.bf16.xpose.msra.mxu0 %v112_v17 }
  0x34   :  { %224 = vmatprep.subr.bf16.mxu0 %v270_v1 }
  0x3b   :  { %225 = vmatpush3.bf16.xpose.msra.mxu0 %v115_v19 }
  0x42   :  { %227 = vmatmul.mubr.msk.bf16.vlgmr.msra.gmra.mrb[0].mxu0 %vm89_vm0, %v245_v20 }
  0x84   :  { %v163_v21 = vpop.permute.xlu0 %162 }
  0x88   :  { %v168_v30 = vpop.permute.xlu0 %167 }
 0x115   :  { %v151_v23 = vpop.f32.mrb[0].mxu0 }
 0x116   :  { %v152_v24 = vadd.f32 %v190_v22, %v151_v23  ;;  %v228_v25 = vpop.f32.mrb[1].mxu0 }
 0x117   :  { %v154_v26 = vpop.f32.mrb[2].mxu0 }
 0x118   :  { %v170_v27 = vsub.f32 %v152_v24, %v163_v21  ;;  %v155_v28 = vadd.f32 %v190_v22, %v154_v26  ;;  %v229_v29 = vpop.f32.mrb[3].mxu0 }
 0x11a   :  { %172 = vst [vmem:[#allocation2] sm:$0xff] %v170_v27  ;;  %v171_v31 = vsub.f32 %v155_v28, %v168_v30 }
 0x11c   :  { %173 = vst [vmem:[#allocation2 + $0x8] sm:$0xff] %v171_v31 }
 0x11d   :  { %257 = shalt.err (!%p254_p4)
}
 0x11e   :  { %s258_s14 = scalar_lea.hbm %s362_s4, 256 }
 0x11f   :  { %p259_p5 = scmp.ne.s32.totalorder %s362_s4, %s258_s14  ;;  %p262_p6 = scmp.lt.u32.totalorder %s258_s14, %s362_s4 }
 0x121   :  { %p264_p7 = pnand %p262_p6, %p259_p5 }
 0x123   :  { %267 = shalt.err (!%p264_p7)
}
 0x124   :  { %s274_s19 = smov 128   ;;  %s275_s20 = smov 8  }
 0x125   :  { %185 = dma.vmem_to_hbm [thread:$0]  %s180_s13, 256, %s362_s4, [#allocation3], %s274_s19, %s274_s19, %s275_s20  }
 0x126   :  { %268 = dma.done.wait [#allocation3], 256  }
 0x127   :  { %269 = vsyncadd [#allocation3], 4294967040 }
 0x128   :  { %189 = vsyncpa [#allocation3], 1 }

// kernel: bert_finetune_forward.24
= control target key start
LH: loop header
LB: loop body
LE: loop exit
PB: predicated region body
PF: predicated region fallthrough
CT: control target
= control target key end

     0   :  { %vm94_vm0 = vcmask 261120   ;;  %v294_v0 = vmov 0.0   ;;  %vm295_vm1 = vmmov 0   ;;  %vm19_vm2 = vcmask 7168   ;;  %s373_s1 = inlined_call_operand.vmem [shape: bf16[128,32], index: 1, kind: input, shape index: {}]   ;;  %s374_s0 = inlined_call_operand.vmem [shape: bf16[16,32], index: 0, kind: input, shape index: {}]   ;;  %s375_s2 = inlined_call_operand.vmem [shape: f32[1,128], index: 2, kind: input, shape index: {}]   ;;  %s376_s3 = inlined_call_operand.vmem [shape: f32[16,1], index: 3, kind: output, shape index: {}]  }
   0x1   :  { %247 = vmatprep.subr.bf16.mxu0 %v294_v0  ;;  %v273_v1 = vld [vmem:[%s373_s1] sm:$0xff]   ;;  %263 = vmatprep.mubr.msk.bf16.mxu0 %vm295_vm1, %v294_v0  ;;  %v274_v3 = vld [vmem:[%s373_s1 + $0x8] sm:$0xff]   ;;  %v275_v5 = vld [vmem:[%s373_s1 + $0x10] sm:$0xff]   ;;  %v296_v18 = vmov -inf   ;;  %22 = vst.msk [vmem:[#allocation3] sm:$0xff] %vm19_vm2, %v294_v0  ;;  %v297_v26 = vmov 0  }
   0x2   :  { %v99_v2 = vsel %vm94_vm0, %v273_v1, 0  ;;  %v102_v4 = vsel %vm94_vm0, %v274_v3, 0  ;;  %v105_v6 = vsel %vm94_vm0, %v275_v5, 0  ;;  %v276_v7 = vld [vmem:[%s373_s1 + $0x18] sm:$0xff]   ;;  %v277_v9 = vld [vmem:[%s373_s1 + $0x20] sm:$0xff]   ;;  %v278_v11 = vld [vmem:[%s373_s1 + $0x28] sm:$0xff]   ;;  %271 = vset.pattern.permute.xlu1 %v297_v26  ;;  %272 = vset.pattern.permute.xlu0 %v297_v26 }
   0x3   :  { %248 = vmatpush3.bf16.xpose.msra.mxu0 %v99_v2  ;;  %v108_v8 = vsel %vm94_vm0, %v276_v7, 0  ;;  %v111_v10 = vsel %vm94_vm0, %v277_v9, 0  ;;  %v114_v12 = vsel %vm94_vm0, %v278_v11, 0  ;;  %v279_v13 = vld [vmem:[%s373_s1 + $0x30] sm:$0xff]   ;;  %v280_v15 = vld [vmem:[%s373_s1 + $0x38] sm:$0xff]   ;;  %v281_v17 = vld [vmem:[%s374_s0] sm:$0xff]  }
   0x4   :  { %249 = vmatprep.subr.bf16.mxu0 %v294_v0  ;;  %v117_v14 = vsel %vm94_vm0, %v279_v13, 0  ;;  %v120_v16 = vsel %vm94_vm0, %v280_v15, 0  ;;  %20 = vst.msk [vmem:[#allocation2] sm:$0xff] %vm19_vm2, %v296_v18  ;;  %21 = vst.msk [vmem:[#allocation2 + $0x8] sm:$0xff] %vm19_vm2, %v296_v18  ;;  %v227_v19 = vld [vmem:[%s375_s2] ss:$0 sm:$0xff] }
   0x5   :  { %23 = vst.msk [vmem:[#allocation3 + $0x8] sm:$0xff] %vm19_vm2, %v294_v0 }
   0x8   :  { %v171_v46 = vld [vmem:[#allocation3] sm:$0xff] }
   0xb   :  { %250 = vmatpush3.bf16.xpose.msra.mxu0 %v102_v4  ;;  %v163_v27 = vld [vmem:[#allocation2] sm:$0xff]  ;;  %v164_v30 = vld [vmem:[#allocation2 + $0x8] sm:$0xff] }
   0xc   :  { %251 = vmatprep.subr.bf16.mxu0 %v294_v0  ;;  %v172_v50 = vld [vmem:[#allocation3 + $0x8] sm:$0xff] }
  0x13   :  { %252 = vmatpush3.bf16.xpose.msra.mxu0 %v105_v6 }
  0x14   :  { %253 = vmatprep.subr.bf16.mxu0 %v294_v0 }
  0x1b   :  { %254 = vmatpush3.bf16.xpose.msra.mxu0 %v108_v8 }
  0x1c   :  { %255 = vmatprep.subr.bf16.mxu0 %v294_v0 }
  0x23   :  { %256 = vmatpush3.bf16.xpose.msra.mxu0 %v111_v10 }
  0x24   :  { %257 = vmatprep.subr.bf16.mxu0 %v294_v0 }
  0x2b   :  { %258 = vmatpush3.bf16.xpose.msra.mxu0 %v114_v12 }
  0x2c   :  { %259 = vmatprep.subr.bf16.mxu0 %v294_v0 }
  0x33   :  { %260 = vmatpush3.bf16.xpose.msra.mxu0 %v117_v14 }
  0x34   :  { %261 = vmatprep.subr.bf16.mxu0 %v294_v0 }
  0x3b   :  { %262 = vmatpush3.bf16.xpose.msra.mxu0 %v120_v16 }
  0x42   :  { %264 = vmatmul.mubr.msk.bf16.vlgmr.msra.gmra.mrb[0].mxu0 %vm94_vm0, %v281_v17 }
 0x115   :  { %v156_v20 = vpop.f32.mrb[0].mxu0 }
 0x116   :  { %v157_v21 = vadd.f32 %v227_v19, %v156_v20  ;;  %v265_v22 = vpop.f32.mrb[1].mxu0 }
 0x117   :  { %v159_v23 = vpop.f32.mrb[2].mxu0 }
 0x118   :  { %165 = vmax.xlane.f32.xlu0 %v157_v21  ;;  %v266_v24 = vpop.f32.mrb[3].mxu0  ;;  %v160_v25 = vadd.f32 %v227_v19, %v159_v23 }
 0x11c   :  { %167 = vmax.xlane.f32.xlu0 %v160_v25 }
 0x1a5   :  { %v166_v28 = vpop.xlane.xlu0 %165 }
 0x1a6   :  { %v169_v29 = vmax.f32 %v163_v27, %v166_v28 }
 0x1a8   :  { %v173_v31 = vsub.f32 %v163_v27, %v169_v29  ;;  %206 = vst.msk [vmem:[#allocation2] sm:$0xff] %vm19_vm2, %v169_v29  ;;  %183 = vperm.xlu1 %271, %v169_v29  }
 0x1a9   :  { %v168_v32 = vpop.xlane.xlu0 %167 }
 0x1aa   :  { %v170_v33 = vmax.f32 %v164_v30, %v168_v32  ;;  %v175_v43 = vmul.f32 1.442695, %v173_v31 }
 0x1ac   :  { %v174_v34 = vsub.f32 %v164_v30, %v170_v33  ;;  %207 = vst.msk [vmem:[#allocation2 + $0x8] sm:$0xff] %vm19_vm2, %v170_v33  ;;  %188 = vperm.xlu1 %271, %v170_v33  }
 0x1ae   :  { %v177_v44 = vmul.f32 1.442695, %v174_v34 }
 0x1af   :  { %v211_v59 = vld [vmem:[#allocation2] sm:$0xff] }
 0x1b3   :  { %v212_v63 = vld [vmem:[#allocation2 + $0x8] sm:$0xff] }
 0x227   :  { %v184_v35 = vpop.permute.xlu1 %183 }
 0x228   :  { %v191_v36 = vsub.f32 %v157_v21, %v184_v35 }
 0x22a   :  { %v193_v37 = vmul.f32 1.442695, %v191_v36 }
 0x22b   :  { %v189_v38 = vpop.permute.xlu1 %188 }
 0x22c   :  { %282 = vpow2.f32 %v193_v37  ;;  %v192_v39 = vsub.f32 %v160_v25, %v189_v38 }
 0x22e   :  { %v195_v40 = vmul.f32 1.442695, %v192_v39 }
 0x230   :  { %284 = vpow2.f32 %v195_v40 }
 0x231   :  { %286 = vpow2.f32 %v175_v43 }
 0x232   :  { %288 = vpow2.f32 %v177_v44 }
 0x236   :  { %v283_v41 = vpop.eup %282 }
 0x237   :  { %197 = vadd.xlane.f32.xlu0 %v283_v41 }
 0x23a   :  { %v285_v42 = vpop.eup %284 }
 0x23b   :  { %199 = vadd.xlane.f32.xlu1 %v285_v42  ;;  %v287_v45 = vpop.eup %286 }
 0x23c   :  { %v179_v47 = vmul.f32 %v287_v45, %v171_v46  ;;  %v289_v48 = vpop.eup %288 }
 0x23d   :  { %v180_v52 = vmul.f32 %v289_v48, %v172_v50 }
 0x2c4   :  { %v198_v49 = vpop.xlane.xlu0 %197 }
 0x2c5   :  { %v201_v51 = vadd.f32 %v198_v49, %v179_v47 }
 0x2c7   :  { %204 = vst.msk [vmem:[#allocation3] sm:$0xff] %vm19_vm2, %v201_v51 }
 0x2c8   :  { %v200_v53 = vpop.xlane.xlu1 %199 }
 0x2c9   :  { %v202_v54 = vadd.f32 %v200_v53, %v180_v52 }
 0x2cb   :  { %205 = vst.msk [vmem:[#allocation3 + $0x8] sm:$0xff] %vm19_vm2, %v202_v54 }
 0x2ce   :  { %v213_v55 = vld [vmem:[#allocation3] sm:$0xff] }
 0x2cf   :  { %290 = vlog2.f32 %v213_v55 }
 0x2d2   :  { %v214_v56 = vld [vmem:[#allocation3 + $0x8] sm:$0xff] }
 0x2d3   :  { %292 = vlog2.f32 %v214_v56 }
 0x2d9   :  { %v291_v57 = vpop.eup %290 }
 0x2da   :  { %v216_v58 = vmul.f32 0.6931472, %v291_v57 }
 0x2dc   :  { %v219_v60 = vadd.f32 %v216_v58, %v211_v59 }
 0x2dd   :  { %v293_v61 = vpop.eup %292 }
 0x2de   :  { %221 = vst.msk [vmem:[%s376_s3] sm:$0xff] %vm19_vm2, %v219_v60  ;;  %v218_v62 = vmul.f32 0.6931472, %v293_v61 }
 0x2e0   :  { %v220_v0 = vadd.f32 %v218_v62, %v212_v63 }
 0x2e2   :  { %222 = vst.msk [vmem:[%s376_s3 + $0x8] sm:$0xff] %vm19_vm2, %v220_v0 }

</bundles_post_ra>
